<compile_context>
chip_gen: v7x
topology: tpu7x:2x2x1
jax: 0.10.0
libtpu: 0.0.40
codegen_flags: <defaults>
</compile_context>

<pallas_src>
import jax
import jax.numpy as jnp
from jax.experimental import pallas as pl
from jax.experimental.pallas import tpu as pltpu


def _lstm_recurrence_kernel(xg_ref, whh_ref, out_ref):
    """Serial LSTM recurrence; everything VMEM-resident, single grid step.

    xg_ref  : (T, 4H, B)  precomputed input projection x @ W_ih^T + b (transposed layout)
    whh_ref : (4H, H)     hidden->gates weights (torch layout, gate order i,f,g,o)
    out_ref : (T, H, B)   hidden-state sequence; flushed to HBM once after the step
    """
    T = xg_ref.shape[0]
    H = whh_ref.shape[1]
    B = xg_ref.shape[2]

    w_hh = whh_ref[...]  # load once, reused every step

    h = jnp.zeros((H, B), jnp.float32)
    c = jnp.zeros((H, B), jnp.float32)

    for t in range(T):  # T is small & static -> fully unrolled
        gates = xg_ref[t]  # (4H, B)
        if t > 0:
            # h0 == 0, so the recurrent matmul is skipped at t == 0.
            gates = gates + jnp.dot(w_hh, h, preferred_element_type=jnp.float32)

        # PyTorch gate order i, f, g, o; gate index lives on the sublane axis,
        # so these are cheap sublane slices (offsets are multiples of 8).
        i_g = jax.nn.sigmoid(gates[0 * H:1 * H])
        f_g = jax.nn.sigmoid(gates[1 * H:2 * H])
        g_g = jnp.tanh(gates[2 * H:3 * H])
        o_g = jax.nn.sigmoid(gates[3 * H:4 * H])

        c = f_g * c + i_g * g_g
        h = o_g * jnp.tanh(c)

        out_ref[t] = h.astype(out_ref.dtype)  # (H, B) slice into the resident VMEM slab


@jax.jit
def microbiome_module_forward(x, w_ih, w_hh, b_ih, b_hh):
    """Forward pass of MicrobiomeModule (== SequenceModule forward).

    x     : (B, T, I)  any float dtype; cast to f32 like `.float()` in torch
    w_ih  : (4H, I)    torch weight_ih_l0
    w_hh  : (4H, H)    torch weight_hh_l0
    b_ih  : (4H,)      torch bias_ih_l0
    b_hh  : (4H,)      torch bias_hh_l0
    returns (B, T, H) float32 output sequence.
    """
    x = x.astype(jnp.float32)
    B, T, I = x.shape
    H = w_hh.shape[1]

    w_ih = w_ih.astype(jnp.float32)
    w_hh = w_hh.astype(jnp.float32)
    bias = (b_ih + b_hh).astype(jnp.float32)

    # Hoisted input projection: one (T*B, I) x (I, 4H) matmul (done by XLA on the MXU),
    # produced directly in the (T, 4H, B) layout the kernel consumes. The bias is folded
    # in here so the recurrence never touches it.
    x_gates = jnp.einsum("bti,gi->tgb", x, w_ih,
                         preferred_element_type=jnp.float32) + bias[None, :, None]

    out_thb = pl.pallas_call(
        _lstm_recurrence_kernel,
        out_shape=jax.ShapeDtypeStruct((T, H, B), jnp.float32),
        grid_spec=pltpu.PrefetchScalarGridSpec(
            num_scalar_prefetch=0,
            grid=(1,),  # single step: whole recurrence in one kernel invocation
            in_specs=[
                pl.BlockSpec((T, 4 * H, B), lambda i: (0, 0, 0)),  # x_gates, fully resident
                pl.BlockSpec((4 * H, H), lambda i: (0, 0)),        # W_hh, fully resident
            ],
            out_specs=pl.BlockSpec((T, H, B), lambda i: (0, 0, 0)),  # single HBM writeback
        ),
        compiler_params=pltpu.CompilerParams(
            dimension_semantics=("arbitrary",),
        ),
    )(x_gates, w_hh)

    # Layout plumbing back to PyTorch batch_first: (T, H, B) -> (B, T, H).
    return jnp.transpose(out_thb, (2, 0, 1))


def _lstm_reference(x, w_ih, w_hh, b_ih, b_hh):
    """Pure-JAX reference (same math as torch.nn.LSTM, 1 layer, no dropout)."""
    x = x.astype(jnp.float32)
    B, T, I = x.shape
    H = w_hh.shape[1]
    wih_t = w_ih.T.astype(jnp.float32)
    whh_t = w_hh.T.astype(jnp.float32)
    b = (b_ih + b_hh).astype(jnp.float32)

    def step(carry, x_t):
        h, c = carry
        gates = x_t @ wih_t + h @ whh_t + b
        i_g = jax.nn.sigmoid(gates[:, 0 * H:1 * H])
        f_g = jax.nn.sigmoid(gates[:, 1 * H:2 * H])
        g_g = jnp.tanh(gates[:, 2 * H:3 * H])
        o_g = jax.nn.sigmoid(gates[:, 3 * H:4 * H])
        c = f_g * c + i_g * g_g
        h = o_g * jnp.tanh(c)
        return (h, c), h

    init = (jnp.zeros((B, H), jnp.float32), jnp.zeros((B, H), jnp.float32))
    _, ys = jax.lax.scan(step, init, jnp.swapaxes(x, 0, 1))
    return jnp.swapaxes(ys, 0, 1)


if __name__ == "__main__":
    # Small shapes consistent with the module's forward:
    #   params.LSTM_hidden_dim (= input_size I) = 32
    #   params.LSTM_layers     (= hidden_size H, due to the positional-arg quirk) = 16
    B, T, I, H = 2, 8, 32, 16

    key = jax.random.PRNGKey(0)
    kx, k1, k2, k3, k4 = jax.random.split(key, 5)

    # Deterministic parameter init matching torch LSTM shapes and U(-1/sqrt(H), 1/sqrt(H)).
    bound = 1.0 / (H ** 0.5)
    x = jax.random.normal(kx, (B, T, I), dtype=jnp.float32)
    w_ih = jax.random.uniform(k1, (4 * H, I), minval=-bound, maxval=bound, dtype=jnp.float32)
    w_hh = jax.random.uniform(k2, (4 * H, H), minval=-bound, maxval=bound, dtype=jnp.float32)
    b_ih = jax.random.uniform(k3, (4 * H,), minval=-bound, maxval=bound, dtype=jnp.float32)
    b_hh = jax.random.uniform(k4, (4 * H,), minval=-bound, maxval=bound, dtype=jnp.float32)

    out = microbiome_module_forward(x, w_ih, w_hh, b_ih, b_hh)
    out = jax.block_until_ready(out)

    ref = _lstm_reference(x, w_ih, w_hh, b_ih, b_hh)
    assert out.shape == (B, T, H)
    assert jnp.allclose(out, ref, atol=1e-5, rtol=1e-5)

    print("KERNEL_OK")
</pallas_src>

<mosaic_0001>
module attributes {stable_mosaic.version = 11 : i64} {
  func.func @_lstm_recurrence_kernel(%arg0: i32, %arg1: memref<8x64x2xf32, #tpu.memory_space<vmem>>, %arg2: memref<64x16xf32, #tpu.memory_space<vmem>>, %arg3: memref<8x16x2xf32, #tpu.memory_space<vmem>>) attributes {dimension_semantics = [#tpu.dimension_semantics<arbitrary>], iteration_bounds = array<i64: 1>, scalar_prefetch = 0 : i64, scratch_operands = 0 : i64, tpu.core_type = #tpu.core_type<tc>, window_params = [{pipeline_mode = #tpu.pipeline_mode<synchronous>, transform_indices = @transform_0, window_bounds = array<i64: 8, 64, 2>}, {pipeline_mode = #tpu.pipeline_mode<synchronous>, transform_indices = @transform_1, window_bounds = array<i64: 64, 16>}, {pipeline_mode = #tpu.pipeline_mode<synchronous>, transform_indices = @transform_2, window_bounds = array<i64: 8, 16, 2>}]} {
    %c0 = arith.constant 0 : index
    %c0_0 = arith.constant 0 : index
    %0 = vector.load %arg2[%c0, %c0_0] : memref<64x16xf32, #tpu.memory_space<vmem>>, vector<64x16xf32>
    %cst = arith.constant 0.000000e+00 : f32
    %1 = vector.broadcast %cst : f32 to vector<16x2xf32>
    %c0_1 = arith.constant 0 : index
    %c0_2 = arith.constant 0 : index
    %c0_3 = arith.constant 0 : index
    %2 = vector.load %arg1[%c0_1, %c0_2, %c0_3] : memref<8x64x2xf32, #tpu.memory_space<vmem>>, vector<1x64x2xf32>
    %3 = vector.shape_cast %2 : vector<1x64x2xf32> to vector<64x2xf32>
    %4 = vector.extract_strided_slice %3 {offsets = [0, 0], sizes = [16, 2], strides = [1, 1]} : vector<64x2xf32> to vector<16x2xf32>
    %5 = arith.negf %4 : vector<16x2xf32>
    %6 = math.exp %5 : vector<16x2xf32>
    %cst_4 = arith.constant 1.000000e+00 : f32
    %7 = vector.broadcast %cst_4 : f32 to vector<16x2xf32>
    %8 = arith.addf %7, %6 : vector<16x2xf32>
    %9 = arith.divf %7, %8 : vector<16x2xf32>
    %10 = vector.extract_strided_slice %3 {offsets = [16, 0], sizes = [16, 2], strides = [1, 1]} : vector<64x2xf32> to vector<16x2xf32>
    %11 = arith.negf %10 : vector<16x2xf32>
    %12 = math.exp %11 : vector<16x2xf32>
    %cst_5 = arith.constant 1.000000e+00 : f32
    %13 = vector.broadcast %cst_5 : f32 to vector<16x2xf32>
    %14 = arith.addf %13, %12 : vector<16x2xf32>
    %15 = arith.divf %13, %14 : vector<16x2xf32>
    %16 = vector.extract_strided_slice %3 {offsets = [32, 0], sizes = [16, 2], strides = [1, 1]} : vector<64x2xf32> to vector<16x2xf32>
    %17 = math.tanh %16 : vector<16x2xf32>
    %18 = vector.extract_strided_slice %3 {offsets = [48, 0], sizes = [16, 2], strides = [1, 1]} : vector<64x2xf32> to vector<16x2xf32>
    %19 = arith.negf %18 : vector<16x2xf32>
    %20 = math.exp %19 : vector<16x2xf32>
    %cst_6 = arith.constant 1.000000e+00 : f32
    %21 = vector.broadcast %cst_6 : f32 to vector<16x2xf32>
    %22 = arith.addf %21, %20 : vector<16x2xf32>
    %23 = arith.divf %21, %22 : vector<16x2xf32>
    %24 = arith.mulf %15, %1 : vector<16x2xf32>
    %25 = arith.mulf %9, %17 : vector<16x2xf32>
    %26 = arith.addf %24, %25 : vector<16x2xf32>
    %27 = math.tanh %26 : vector<16x2xf32>
    %28 = arith.mulf %23, %27 : vector<16x2xf32>
    %c0_7 = arith.constant 0 : index
    %c0_8 = arith.constant 0 : index
    %c0_9 = arith.constant 0 : index
    %29 = vector.load %arg3[%c0_7, %c0_8, %c0_9] : memref<8x16x2xf32, #tpu.memory_space<vmem>>, vector<1x16x2xf32>
    %30 = vector.shape_cast %29 : vector<1x16x2xf32> to vector<16x2xf32>
    %31 = vector.shape_cast %28 : vector<16x2xf32> to vector<1x16x2xf32>
    tpu.vector_store %arg3[%c0_7, %c0_8, %c0_9], %31 {strides = array<i32>} : memref<8x16x2xf32, #tpu.memory_space<vmem>>, vector<1x16x2xf32>,
    %c1 = arith.constant 1 : index
    %c0_10 = arith.constant 0 : index
    %c0_11 = arith.constant 0 : index
    %32 = vector.load %arg1[%c1, %c0_10, %c0_11] : memref<8x64x2xf32, #tpu.memory_space<vmem>>, vector<1x64x2xf32>
    %33 = vector.shape_cast %32 : vector<1x64x2xf32> to vector<64x2xf32>
    %cst_12 = arith.constant dense<0.000000e+00> : vector<64x2xf32>
    %34 = tpu.matmul %0, %28, %cst_12 {dimension_numbers = #tpu.dot_dimension_numbers<[1], [0], [0], [1], [0, 0, 1, 1], [], []>} : vector<64x16xf32>, vector<16x2xf32>, vector<64x2xf32> -> vector<64x2xf32>
    %35 = arith.addf %33, %34 : vector<64x2xf32>
    %36 = vector.extract_strided_slice %35 {offsets = [0, 0], sizes = [16, 2], strides = [1, 1]} : vector<64x2xf32> to vector<16x2xf32>
    %37 = arith.negf %36 : vector<16x2xf32>
    %38 = math.exp %37 : vector<16x2xf32>
    %cst_13 = arith.constant 1.000000e+00 : f32
    %39 = vector.broadcast %cst_13 : f32 to vector<16x2xf32>
    %40 = arith.addf %39, %38 : vector<16x2xf32>
    %41 = arith.divf %39, %40 : vector<16x2xf32>
    %42 = vector.extract_strided_slice %35 {offsets = [16, 0], sizes = [16, 2], strides = [1, 1]} : vector<64x2xf32> to vector<16x2xf32>
    %43 = arith.negf %42 : vector<16x2xf32>
    %44 = math.exp %43 : vector<16x2xf32>
    %cst_14 = arith.constant 1.000000e+00 : f32
    %45 = vector.broadcast %cst_14 : f32 to vector<16x2xf32>
    %46 = arith.addf %45, %44 : vector<16x2xf32>
    %47 = arith.divf %45, %46 : vector<16x2xf32>
    %48 = vector.extract_strided_slice %35 {offsets = [32, 0], sizes = [16, 2], strides = [1, 1]} : vector<64x2xf32> to vector<16x2xf32>
    %49 = math.tanh %48 : vector<16x2xf32>
    %50 = vector.extract_strided_slice %35 {offsets = [48, 0], sizes = [16, 2], strides = [1, 1]} : vector<64x2xf32> to vector<16x2xf32>
    %51 = arith.negf %50 : vector<16x2xf32>
    %52 = math.exp %51 : vector<16x2xf32>
    %cst_15 = arith.constant 1.000000e+00 : f32
    %53 = vector.broadcast %cst_15 : f32 to vector<16x2xf32>
    %54 = arith.addf %53, %52 : vector<16x2xf32>
    %55 = arith.divf %53, %54 : vector<16x2xf32>
    %56 = arith.mulf %47, %26 : vector<16x2xf32>
    %57 = arith.mulf %41, %49 : vector<16x2xf32>
    %58 = arith.addf %56, %57 : vector<16x2xf32>
    %59 = math.tanh %58 : vector<16x2xf32>
    %60 = arith.mulf %55, %59 : vector<16x2xf32>
    %c1_16 = arith.constant 1 : index
    %c0_17 = arith.constant 0 : index
    %c0_18 = arith.constant 0 : index
    %61 = vector.load %arg3[%c1_16, %c0_17, %c0_18] : memref<8x16x2xf32, #tpu.memory_space<vmem>>, vector<1x16x2xf32>
    %62 = vector.shape_cast %61 : vector<1x16x2xf32> to vector<16x2xf32>
    %63 = vector.shape_cast %60 : vector<16x2xf32> to vector<1x16x2xf32>
    tpu.vector_store %arg3[%c1_16, %c0_17, %c0_18], %63 {strides = array<i32>} : memref<8x16x2xf32, #tpu.memory_space<vmem>>, vector<1x16x2xf32>,
    %c2 = arith.constant 2 : index
    %c0_19 = arith.constant 0 : index
    %c0_20 = arith.constant 0 : index
    %64 = vector.load %arg1[%c2, %c0_19, %c0_20] : memref<8x64x2xf32, #tpu.memory_space<vmem>>, vector<1x64x2xf32>
    %65 = vector.shape_cast %64 : vector<1x64x2xf32> to vector<64x2xf32>
    %cst_21 = arith.constant dense<0.000000e+00> : vector<64x2xf32>
    %66 = tpu.matmul %0, %60, %cst_21 {dimension_numbers = #tpu.dot_dimension_numbers<[1], [0], [0], [1], [0, 0, 1, 1], [], []>} : vector<64x16xf32>, vector<16x2xf32>, vector<64x2xf32> -> vector<64x2xf32>
    %67 = arith.addf %65, %66 : vector<64x2xf32>
    %68 = vector.extract_strided_slice %67 {offsets = [0, 0], sizes = [16, 2], strides = [1, 1]} : vector<64x2xf32> to vector<16x2xf32>
    %69 = arith.negf %68 : vector<16x2xf32>
    %70 = math.exp %69 : vector<16x2xf32>
    %cst_22 = arith.constant 1.000000e+00 : f32
    %71 = vector.broadcast %cst_22 : f32 to vector<16x2xf32>
    %72 = arith.addf %71, %70 : vector<16x2xf32>
    %73 = arith.divf %71, %72 : vector<16x2xf32>
    %74 = vector.extract_strided_slice %67 {offsets = [16, 0], sizes = [16, 2], strides = [1, 1]} : vector<64x2xf32> to vector<16x2xf32>
    %75 = arith.negf %74 : vector<16x2xf32>
    %76 = math.exp %75 : vector<16x2xf32>
    %cst_23 = arith.constant 1.000000e+00 : f32
    %77 = vector.broadcast %cst_23 : f32 to vector<16x2xf32>
    %78 = arith.addf %77, %76 : vector<16x2xf32>
    %79 = arith.divf %77, %78 : vector<16x2xf32>
    %80 = vector.extract_strided_slice %67 {offsets = [32, 0], sizes = [16, 2], strides = [1, 1]} : vector<64x2xf32> to vector<16x2xf32>
    %81 = math.tanh %80 : vector<16x2xf32>
    %82 = vector.extract_strided_slice %67 {offsets = [48, 0], sizes = [16, 2], strides = [1, 1]} : vector<64x2xf32> to vector<16x2xf32>
    %83 = arith.negf %82 : vector<16x2xf32>
    %84 = math.exp %83 : vector<16x2xf32>
    %cst_24 = arith.constant 1.000000e+00 : f32
    %85 = vector.broadcast %cst_24 : f32 to vector<16x2xf32>
    %86 = arith.addf %85, %84 : vector<16x2xf32>
    %87 = arith.divf %85, %86 : vector<16x2xf32>
    %88 = arith.mulf %79, %58 : vector<16x2xf32>
    %89 = arith.mulf %73, %81 : vector<16x2xf32>
    %90 = arith.addf %88, %89 : vector<16x2xf32>
    %91 = math.tanh %90 : vector<16x2xf32>
    %92 = arith.mulf %87, %91 : vector<16x2xf32>
    %c2_25 = arith.constant 2 : index
    %c0_26 = arith.constant 0 : index
    %c0_27 = arith.constant 0 : index
    %93 = vector.load %arg3[%c2_25, %c0_26, %c0_27] : memref<8x16x2xf32, #tpu.memory_space<vmem>>, vector<1x16x2xf32>
    %94 = vector.shape_cast %93 : vector<1x16x2xf32> to vector<16x2xf32>
    %95 = vector.shape_cast %92 : vector<16x2xf32> to vector<1x16x2xf32>
    tpu.vector_store %arg3[%c2_25, %c0_26, %c0_27], %95 {strides = array<i32>} : memref<8x16x2xf32, #tpu.memory_space<vmem>>, vector<1x16x2xf32>,
    %c3 = arith.constant 3 : index
    %c0_28 = arith.constant 0 : index
    %c0_29 = arith.constant 0 : index
    %96 = vector.load %arg1[%c3, %c0_28, %c0_29] : memref<8x64x2xf32, #tpu.memory_space<vmem>>, vector<1x64x2xf32>
    %97 = vector.shape_cast %96 : vector<1x64x2xf32> to vector<64x2xf32>
    %cst_30 = arith.constant dense<0.000000e+00> : vector<64x2xf32>
    %98 = tpu.matmul %0, %92, %cst_30 {dimension_numbers = #tpu.dot_dimension_numbers<[1], [0], [0], [1], [0, 0, 1, 1], [], []>} : vector<64x16xf32>, vector<16x2xf32>, vector<64x2xf32> -> vector<64x2xf32>
    %99 = arith.addf %97, %98 : vector<64x2xf32>
    %100 = vector.extract_strided_slice %99 {offsets = [0, 0], sizes = [16, 2], strides = [1, 1]} : vector<64x2xf32> to vector<16x2xf32>
    %101 = arith.negf %100 : vector<16x2xf32>
    %102 = math.exp %101 : vector<16x2xf32>
    %cst_31 = arith.constant 1.000000e+00 : f32
    %103 = vector.broadcast %cst_31 : f32 to vector<16x2xf32>
    %104 = arith.addf %103, %102 : vector<16x2xf32>
    %105 = arith.divf %103, %104 : vector<16x2xf32>
    %106 = vector.extract_strided_slice %99 {offsets = [16, 0], sizes = [16, 2], strides = [1, 1]} : vector<64x2xf32> to vector<16x2xf32>
    %107 = arith.negf %106 : vector<16x2xf32>
    %108 = math.exp %107 : vector<16x2xf32>
    %cst_32 = arith.constant 1.000000e+00 : f32
    %109 = vector.broadcast %cst_32 : f32 to vector<16x2xf32>
    %110 = arith.addf %109, %108 : vector<16x2xf32>
    %111 = arith.divf %109, %110 : vector<16x2xf32>
    %112 = vector.extract_strided_slice %99 {offsets = [32, 0], sizes = [16, 2], strides = [1, 1]} : vector<64x2xf32> to vector<16x2xf32>
    %113 = math.tanh %112 : vector<16x2xf32>
    %114 = vector.extract_strided_slice %99 {offsets = [48, 0], sizes = [16, 2], strides = [1, 1]} : vector<64x2xf32> to vector<16x2xf32>
    %115 = arith.negf %114 : vector<16x2xf32>
    %116 = math.exp %115 : vector<16x2xf32>
    %cst_33 = arith.constant 1.000000e+00 : f32
    %117 = vector.broadcast %cst_33 : f32 to vector<16x2xf32>
    %118 = arith.addf %117, %116 : vector<16x2xf32>
    %119 = arith.divf %117, %118 : vector<16x2xf32>
    %120 = arith.mulf %111, %90 : vector<16x2xf32>
    %121 = arith.mulf %105, %113 : vector<16x2xf32>
    %122 = arith.addf %120, %121 : vector<16x2xf32>
    %123 = math.tanh %122 : vector<16x2xf32>
    %124 = arith.mulf %119, %123 : vector<16x2xf32>
    %c3_34 = arith.constant 3 : index
    %c0_35 = arith.constant 0 : index
    %c0_36 = arith.constant 0 : index
    %125 = vector.load %arg3[%c3_34, %c0_35, %c0_36] : memref<8x16x2xf32, #tpu.memory_space<vmem>>, vector<1x16x2xf32>
    %126 = vector.shape_cast %125 : vector<1x16x2xf32> to vector<16x2xf32>
    %127 = vector.shape_cast %124 : vector<16x2xf32> to vector<1x16x2xf32>
    tpu.vector_store %arg3[%c3_34, %c0_35, %c0_36], %127 {strides = array<i32>} : memref<8x16x2xf32, #tpu.memory_space<vmem>>, vector<1x16x2xf32>,
    %c4 = arith.constant 4 : index
    %c0_37 = arith.constant 0 : index
    %c0_38 = arith.constant 0 : index
    %128 = vector.load %arg1[%c4, %c0_37, %c0_38] : memref<8x64x2xf32, #tpu.memory_space<vmem>>, vector<1x64x2xf32>
    %129 = vector.shape_cast %128 : vector<1x64x2xf32> to vector<64x2xf32>
    %cst_39 = arith.constant dense<0.000000e+00> : vector<64x2xf32>
    %130 = tpu.matmul %0, %124, %cst_39 {dimension_numbers = #tpu.dot_dimension_numbers<[1], [0], [0], [1], [0, 0, 1, 1], [], []>} : vector<64x16xf32>, vector<16x2xf32>, vector<64x2xf32> -> vector<64x2xf32>
    %131 = arith.addf %129, %130 : vector<64x2xf32>
    %132 = vector.extract_strided_slice %131 {offsets = [0, 0], sizes = [16, 2], strides = [1, 1]} : vector<64x2xf32> to vector<16x2xf32>
    %133 = arith.negf %132 : vector<16x2xf32>
    %134 = math.exp %133 : vector<16x2xf32>
    %cst_40 = arith.constant 1.000000e+00 : f32
    %135 = vector.broadcast %cst_40 : f32 to vector<16x2xf32>
    %136 = arith.addf %135, %134 : vector<16x2xf32>
    %137 = arith.divf %135, %136 : vector<16x2xf32>
    %138 = vector.extract_strided_slice %131 {offsets = [16, 0], sizes = [16, 2], strides = [1, 1]} : vector<64x2xf32> to vector<16x2xf32>
    %139 = arith.negf %138 : vector<16x2xf32>
    %140 = math.exp %139 : vector<16x2xf32>
    %cst_41 = arith.constant 1.000000e+00 : f32
    %141 = vector.broadcast %cst_41 : f32 to vector<16x2xf32>
    %142 = arith.addf %141, %140 : vector<16x2xf32>
    %143 = arith.divf %141, %142 : vector<16x2xf32>
    %144 = vector.extract_strided_slice %131 {offsets = [32, 0], sizes = [16, 2], strides = [1, 1]} : vector<64x2xf32> to vector<16x2xf32>
    %145 = math.tanh %144 : vector<16x2xf32>
    %146 = vector.extract_strided_slice %131 {offsets = [48, 0], sizes = [16, 2], strides = [1, 1]} : vector<64x2xf32> to vector<16x2xf32>
    %147 = arith.negf %146 : vector<16x2xf32>
    %148 = math.exp %147 : vector<16x2xf32>
    %cst_42 = arith.constant 1.000000e+00 : f32
    %149 = vector.broadcast %cst_42 : f32 to vector<16x2xf32>
    %150 = arith.addf %149, %148 : vector<16x2xf32>
    %151 = arith.divf %149, %150 : vector<16x2xf32>
    %152 = arith.mulf %143, %122 : vector<16x2xf32>
    %153 = arith.mulf %137, %145 : vector<16x2xf32>
    %154 = arith.addf %152, %153 : vector<16x2xf32>
    %155 = math.tanh %154 : vector<16x2xf32>
    %156 = arith.mulf %151, %155 : vector<16x2xf32>
    %c4_43 = arith.constant 4 : index
    %c0_44 = arith.constant 0 : index
    %c0_45 = arith.constant 0 : index
    %157 = vector.load %arg3[%c4_43, %c0_44, %c0_45] : memref<8x16x2xf32, #tpu.memory_space<vmem>>, vector<1x16x2xf32>
    %158 = vector.shape_cast %157 : vector<1x16x2xf32> to vector<16x2xf32>
    %159 = vector.shape_cast %156 : vector<16x2xf32> to vector<1x16x2xf32>
    tpu.vector_store %arg3[%c4_43, %c0_44, %c0_45], %159 {strides = array<i32>} : memref<8x16x2xf32, #tpu.memory_space<vmem>>, vector<1x16x2xf32>,
    %c5 = arith.constant 5 : index
    %c0_46 = arith.constant 0 : index
    %c0_47 = arith.constant 0 : index
    %160 = vector.load %arg1[%c5, %c0_46, %c0_47] : memref<8x64x2xf32, #tpu.memory_space<vmem>>, vector<1x64x2xf32>
    %161 = vector.shape_cast %160 : vector<1x64x2xf32> to vector<64x2xf32>
    %cst_48 = arith.constant dense<0.000000e+00> : vector<64x2xf32>
    %162 = tpu.matmul %0, %156, %cst_48 {dimension_numbers = #tpu.dot_dimension_numbers<[1], [0], [0], [1], [0, 0, 1, 1], [], []>} : vector<64x16xf32>, vector<16x2xf32>, vector<64x2xf32> -> vector<64x2xf32>
    %163 = arith.addf %161, %162 : vector<64x2xf32>
    %164 = vector.extract_strided_slice %163 {offsets = [0, 0], sizes = [16, 2], strides = [1, 1]} : vector<64x2xf32> to vector<16x2xf32>
    %165 = arith.negf %164 : vector<16x2xf32>
    %166 = math.exp %165 : vector<16x2xf32>
    %cst_49 = arith.constant 1.000000e+00 : f32
    %167 = vector.broadcast %cst_49 : f32 to vector<16x2xf32>
    %168 = arith.addf %167, %166 : vector<16x2xf32>
    %169 = arith.divf %167, %168 : vector<16x2xf32>
    %170 = vector.extract_strided_slice %163 {offsets = [16, 0], sizes = [16, 2], strides = [1, 1]} : vector<64x2xf32> to vector<16x2xf32>
    %171 = arith.negf %170 : vector<16x2xf32>
    %172 = math.exp %171 : vector<16x2xf32>
    %cst_50 = arith.constant 1.000000e+00 : f32
    %173 = vector.broadcast %cst_50 : f32 to vector<16x2xf32>
    %174 = arith.addf %173, %172 : vector<16x2xf32>
    %175 = arith.divf %173, %174 : vector<16x2xf32>
    %176 = vector.extract_strided_slice %163 {offsets = [32, 0], sizes = [16, 2], strides = [1, 1]} : vector<64x2xf32> to vector<16x2xf32>
    %177 = math.tanh %176 : vector<16x2xf32>
    %178 = vector.extract_strided_slice %163 {offsets = [48, 0], sizes = [16, 2], strides = [1, 1]} : vector<64x2xf32> to vector<16x2xf32>
    %179 = arith.negf %178 : vector<16x2xf32>
    %180 = math.exp %179 : vector<16x2xf32>
    %cst_51 = arith.constant 1.000000e+00 : f32
    %181 = vector.broadcast %cst_51 : f32 to vector<16x2xf32>
    %182 = arith.addf %181, %180 : vector<16x2xf32>
    %183 = arith.divf %181, %182 : vector<16x2xf32>
    %184 = arith.mulf %175, %154 : vector<16x2xf32>
    %185 = arith.mulf %169, %177 : vector<16x2xf32>
    %186 = arith.addf %184, %185 : vector<16x2xf32>
    %187 = math.tanh %186 : vector<16x2xf32>
    %188 = arith.mulf %183, %187 : vector<16x2xf32>
    %c5_52 = arith.constant 5 : index
    %c0_53 = arith.constant 0 : index
    %c0_54 = arith.constant 0 : index
    %189 = vector.load %arg3[%c5_52, %c0_53, %c0_54] : memref<8x16x2xf32, #tpu.memory_space<vmem>>, vector<1x16x2xf32>
    %190 = vector.shape_cast %189 : vector<1x16x2xf32> to vector<16x2xf32>
    %191 = vector.shape_cast %188 : vector<16x2xf32> to vector<1x16x2xf32>
    tpu.vector_store %arg3[%c5_52, %c0_53, %c0_54], %191 {strides = array<i32>} : memref<8x16x2xf32, #tpu.memory_space<vmem>>, vector<1x16x2xf32>,
    %c6 = arith.constant 6 : index
    %c0_55 = arith.constant 0 : index
    %c0_56 = arith.constant 0 : index
    %192 = vector.load %arg1[%c6, %c0_55, %c0_56] : memref<8x64x2xf32, #tpu.memory_space<vmem>>, vector<1x64x2xf32>
    %193 = vector.shape_cast %192 : vector<1x64x2xf32> to vector<64x2xf32>
    %cst_57 = arith.constant dense<0.000000e+00> : vector<64x2xf32>
    %194 = tpu.matmul %0, %188, %cst_57 {dimension_numbers = #tpu.dot_dimension_numbers<[1], [0], [0], [1], [0, 0, 1, 1], [], []>} : vector<64x16xf32>, vector<16x2xf32>, vector<64x2xf32> -> vector<64x2xf32>
    %195 = arith.addf %193, %194 : vector<64x2xf32>
    %196 = vector.extract_strided_slice %195 {offsets = [0, 0], sizes = [16, 2], strides = [1, 1]} : vector<64x2xf32> to vector<16x2xf32>
    %197 = arith.negf %196 : vector<16x2xf32>
    %198 = math.exp %197 : vector<16x2xf32>
    %cst_58 = arith.constant 1.000000e+00 : f32
    %199 = vector.broadcast %cst_58 : f32 to vector<16x2xf32>
    %200 = arith.addf %199, %198 : vector<16x2xf32>
    %201 = arith.divf %199, %200 : vector<16x2xf32>
    %202 = vector.extract_strided_slice %195 {offsets = [16, 0], sizes = [16, 2], strides = [1, 1]} : vector<64x2xf32> to vector<16x2xf32>
    %203 = arith.negf %202 : vector<16x2xf32>
    %204 = math.exp %203 : vector<16x2xf32>
    %cst_59 = arith.constant 1.000000e+00 : f32
    %205 = vector.broadcast %cst_59 : f32 to vector<16x2xf32>
    %206 = arith.addf %205, %204 : vector<16x2xf32>
    %207 = arith.divf %205, %206 : vector<16x2xf32>
    %208 = vector.extract_strided_slice %195 {offsets = [32, 0], sizes = [16, 2], strides = [1, 1]} : vector<64x2xf32> to vector<16x2xf32>
    %209 = math.tanh %208 : vector<16x2xf32>
    %210 = vector.extract_strided_slice %195 {offsets = [48, 0], sizes = [16, 2], strides = [1, 1]} : vector<64x2xf32> to vector<16x2xf32>
    %211 = arith.negf %210 : vector<16x2xf32>
    %212 = math.exp %211 : vector<16x2xf32>
    %cst_60 = arith.constant 1.000000e+00 : f32
    %213 = vector.broadcast %cst_60 : f32 to vector<16x2xf32>
    %214 = arith.addf %213, %212 : vector<16x2xf32>
    %215 = arith.divf %213, %214 : vector<16x2xf32>
    %216 = arith.mulf %207, %186 : vector<16x2xf32>
    %217 = arith.mulf %201, %209 : vector<16x2xf32>
    %218 = arith.addf %216, %217 : vector<16x2xf32>
    %219 = math.tanh %218 : vector<16x2xf32>
    %220 = arith.mulf %215, %219 : vector<16x2xf32>
    %c6_61 = arith.constant 6 : index
    %c0_62 = arith.constant 0 : index
    %c0_63 = arith.constant 0 : index
    %221 = vector.load %arg3[%c6_61, %c0_62, %c0_63] : memref<8x16x2xf32, #tpu.memory_space<vmem>>, vector<1x16x2xf32>
    %222 = vector.shape_cast %221 : vector<1x16x2xf32> to vector<16x2xf32>
    %223 = vector.shape_cast %220 : vector<16x2xf32> to vector<1x16x2xf32>
    tpu.vector_store %arg3[%c6_61, %c0_62, %c0_63], %223 {strides = array<i32>} : memref<8x16x2xf32, #tpu.memory_space<vmem>>, vector<1x16x2xf32>,
    %c7 = arith.constant 7 : index
    %c0_64 = arith.constant 0 : index
    %c0_65 = arith.constant 0 : index
    %224 = vector.load %arg1[%c7, %c0_64, %c0_65] : memref<8x64x2xf32, #tpu.memory_space<vmem>>, vector<1x64x2xf32>
    %225 = vector.shape_cast %224 : vector<1x64x2xf32> to vector<64x2xf32>
    %cst_66 = arith.constant dense<0.000000e+00> : vector<64x2xf32>
    %226 = tpu.matmul %0, %220, %cst_66 {dimension_numbers = #tpu.dot_dimension_numbers<[1], [0], [0], [1], [0, 0, 1, 1], [], []>} : vector<64x16xf32>, vector<16x2xf32>, vector<64x2xf32> -> vector<64x2xf32>
    %227 = arith.addf %225, %226 : vector<64x2xf32>
    %228 = vector.extract_strided_slice %227 {offsets = [0, 0], sizes = [16, 2], strides = [1, 1]} : vector<64x2xf32> to vector<16x2xf32>
    %229 = arith.negf %228 : vector<16x2xf32>
    %230 = math.exp %229 : vector<16x2xf32>
    %cst_67 = arith.constant 1.000000e+00 : f32
    %231 = vector.broadcast %cst_67 : f32 to vector<16x2xf32>
    %232 = arith.addf %231, %230 : vector<16x2xf32>
    %233 = arith.divf %231, %232 : vector<16x2xf32>
    %234 = vector.extract_strided_slice %227 {offsets = [16, 0], sizes = [16, 2], strides = [1, 1]} : vector<64x2xf32> to vector<16x2xf32>
    %235 = arith.negf %234 : vector<16x2xf32>
    %236 = math.exp %235 : vector<16x2xf32>
    %cst_68 = arith.constant 1.000000e+00 : f32
    %237 = vector.broadcast %cst_68 : f32 to vector<16x2xf32>
    %238 = arith.addf %237, %236 : vector<16x2xf32>
    %239 = arith.divf %237, %238 : vector<16x2xf32>
    %240 = vector.extract_strided_slice %227 {offsets = [32, 0], sizes = [16, 2], strides = [1, 1]} : vector<64x2xf32> to vector<16x2xf32>
    %241 = math.tanh %240 : vector<16x2xf32>
    %242 = vector.extract_strided_slice %227 {offsets = [48, 0], sizes = [16, 2], strides = [1, 1]} : vector<64x2xf32> to vector<16x2xf32>
    %243 = arith.negf %242 : vector<16x2xf32>
    %244 = math.exp %243 : vector<16x2xf32>
    %cst_69 = arith.constant 1.000000e+00 : f32
    %245 = vector.broadcast %cst_69 : f32 to vector<16x2xf32>
    %246 = arith.addf %245, %244 : vector<16x2xf32>
    %247 = arith.divf %245, %246 : vector<16x2xf32>
    %248 = arith.mulf %239, %218 : vector<16x2xf32>
    %249 = arith.mulf %233, %241 : vector<16x2xf32>
    %250 = arith.addf %248, %249 : vector<16x2xf32>
    %251 = math.tanh %250 : vector<16x2xf32>
    %252 = arith.mulf %247, %251 : vector<16x2xf32>
    %c7_70 = arith.constant 7 : index
    %c0_71 = arith.constant 0 : index
    %c0_72 = arith.constant 0 : index
    %253 = vector.load %arg3[%c7_70, %c0_71, %c0_72] : memref<8x16x2xf32, #tpu.memory_space<vmem>>, vector<1x16x2xf32>
    %254 = vector.shape_cast %253 : vector<1x16x2xf32> to vector<16x2xf32>
    %255 = vector.shape_cast %252 : vector<16x2xf32> to vector<1x16x2xf32>
    tpu.vector_store %arg3[%c7_70, %c0_71, %c0_72], %255 {strides = array<i32>} : memref<8x16x2xf32, #tpu.memory_space<vmem>>, vector<1x16x2xf32>,
    return
  }
  func.func @transform_0(%arg0: i32) -> (i32, i32, i32) {
    %c0_i32 = arith.constant 0 : i32
    %c0_i32_0 = arith.constant 0 : i32
    %c0_i32_1 = arith.constant 0 : i32
    %c0_i32_2 = arith.constant 0 : i32
    return %c0_i32, %c0_i32_0, %c0_i32_1 : i32, i32, i32
  }
  func.func @transform_1(%arg0: i32) -> (i32, i32) {
    %c0_i32 = arith.constant 0 : i32
    %c0_i32_0 = arith.constant 0 : i32
    %c0_i32_1 = arith.constant 0 : i32
    return %c0_i32, %c0_i32_0 : i32, i32
  }
  func.func @transform_2(%arg0: i32) -> (i32, i32, i32) {
    %c0_i32 = arith.constant 0 : i32
    %c0_i32_0 = arith.constant 0 : i32
    %c0_i32_1 = arith.constant 0 : i32
    %c0_i32_2 = arith.constant 0 : i32
    return %c0_i32, %c0_i32_0, %c0_i32_1 : i32, i32, i32
  }
}

</mosaic_0001>

<bundles_post_ra>
// kernel: microbiome_module_forward.1
= control target key start
LH: loop header
LB: loop body
LE: loop exit
PB: predicated region body
PF: predicated region fallthrough
CT: control target
= control target key end

     0   :  { %vm87_vm0 = vcmask 130048   ;;  %vm75_vm1 = vcmask 15360   ;;  %s2463_s0 = inlined_call_operand.vmem [shape: f32[8,64,2], index: 0, kind: input, shape index: {}]   ;;  %s2464_s1 = inlined_call_operand.vmem [shape: f32[64,16], index: 1, kind: input, shape index: {}]   ;;  %s2465_s2 = inlined_call_operand.vmem [shape: f32[8,16,2], index: 2, kind: output, shape index: {}]  }
   0x1   :  { %v19_v0 = vld [vmem:[%s2463_s0] sm:$0xff]  ;;  %v20_v1 = vld [vmem:[%s2463_s0 + $0x8] sm:$0xff]  ;;  %v21_v2 = vld [vmem:[%s2463_s0 + $0x10] sm:$0xff] }
   0x2   :  { %v22_v3 = vld [vmem:[%s2463_s0 + $0x18] sm:$0xff]  ;;  %v1318_v4 = vmul.f32 -1.442695, %v19_v0  ;;  %v1319_v5 = vmul.f32 -1.442695, %v20_v1  ;;  %v1997_v8 = vld [vmem:[%s2464_s1] sm:$0xff] }
   0x3   :  { %v1320_v6 = vmul.f32 -1.442695, %v21_v2  ;;  %v1321_v7 = vmul.f32 -1.442695, %v22_v3  ;;  %1566 = vmatprep.mubr.msk.f32.mxu0 %vm87_vm0, %v1997_v8  ;;  %v2004_v9 = vld [vmem:[%s2464_s1 + $0x20] sm:$0xff]  ;;  %v25_v10 = vld [vmem:[%s2463_s0 + $0x30] sm:$0xff] }
   0x4   :  { %1704 = vpow2.f32 %v1318_v4  ;;  %1572 = vmatprep.mubr.msk.f32.mxu1 %vm87_vm0, %v2004_v9  ;;  %v26_v11 = vld [vmem:[%s2463_s0 + $0x38] sm:$0xff]  ;;  %v23_v12 = vld [vmem:[%s2463_s0 + $0x20] sm:$0xff]  ;;  %v24_v13 = vld [vmem:[%s2463_s0 + $0x28] sm:$0xff]  ;;  %v1322_v14 = vmul.f32 -1.442695, %v25_v10 }
   0x5   :  { %1706 = vpow2.f32 %v1319_v5  ;;  %v1323_v15 = vmul.f32 -1.442695, %v26_v11  ;;  %v2037_v47 = vld [vmem:[%s2464_s1 + $0x8] sm:$0xff]  ;;  %v2047_v49 = vld [vmem:[%s2464_s1 + $0x10] sm:$0xff]  ;;  %v2063_v51 = vld [vmem:[%s2464_s1 + $0x18] sm:$0xff] }
   0x6   :  { %1708 = vpow2.f32 %v1320_v6  ;;  %v2042_v48 = vld [vmem:[%s2464_s1 + $0x28] sm:$0xff]  ;;  %v2052_v50 = vld [vmem:[%s2464_s1 + $0x30] sm:$0xff]  ;;  %v2070_v52 = vld [vmem:[%s2464_s1 + $0x38] sm:$0xff] }
   0x7   :  { %1710 = vpow2.f32 %v1321_v7  ;;  %v1325_v53 = vld [vmem:[%s2463_s0 + $0x48] sm:$0xff]  ;;  %v1324_v54 = vld [vmem:[%s2463_s0 + $0x40] sm:$0xff]  ;;  %v1327_v61 = vld [vmem:[%s2463_s0 + $0x58] sm:$0xff] }
   0x8   :  { %1712 = vtanh.f32 %v23_v12  ;;  %v1326_v63 = vld [vmem:[%s2463_s0 + $0x50] sm:$0xff]  ;;  %v1331_v5 = vld [vmem:[%s2463_s0 + $0x78] sm:$0xff]  ;;  %v1329_v12 = vld [vmem:[%s2463_s0 + $0x68] sm:$0xff] }
   0x9   :  { %1714 = vtanh.f32 %v24_v13  ;;  %v1330_v10 = vld [vmem:[%s2463_s0 + $0x70] sm:$0xff] }
   0xa   :  { %1716 = vpow2.f32 %v1322_v14  ;;  %v1328_v14 = vld [vmem:[%s2463_s0 + $0x60] sm:$0xff] }
   0xb   :  { %1718 = vpow2.f32 %v1323_v15 }
   0xe   :  { %v1705_v16 = vpop.eup %1704 }
   0xf   :  { %v1707_v17 = vpop.eup %1706  ;;  %v33_v18 = vadd.f32 1.0, %v1705_v16 }
  0x10   :  { %v1709_v19 = vpop.eup %1708  ;;  %v34_v20 = vadd.f32 1.0, %v1707_v17 }
  0x11   :  { %v1711_v21 = vpop.eup %1710  ;;  %1720 = vrcp.f32 %v33_v18  ;;  %v45_v22 = vadd.f32 1.0, %v1709_v19 }
  0x12   :  { %1722 = vrcp.f32 %v34_v20  ;;  %v46_v23 = vadd.f32 1.0, %v1711_v21  ;;  %v1713_v24 = vpop.eup %1712 }
  0x13   :  { %1724 = vrcp.f32 %v45_v22  ;;  %v1715_v25 = vpop.eup %1714 }
  0x14   :  { %1726 = vrcp.f32 %v46_v23  ;;  %v1717_v26 = vpop.eup %1716 }
  0x15   :  { %v1719_v27 = vpop.eup %1718  ;;  %v59_v30 = vadd.f32 1.0, %v1717_v26 }
  0x16   :  { %v60_v33 = vadd.f32 1.0, %v1719_v27 }
  0x17   :  { %1728 = vrcp.f32 %v59_v30 }
  0x18   :  { %1730 = vrcp.f32 %v60_v33 }
  0x1b   :  { %v1721_v28 = vpop.eup %1720 }
  0x1c   :  { %v1723_v29 = vpop.eup %1722  ;;  %v67_v31 = vmul.f32 %v1721_v28, %v1713_v24 }
  0x1d   :  { %v1725_v32 = vpop.eup %1724  ;;  %v68_v34 = vmul.f32 %v1723_v29, %v1715_v25 }
  0x1e   :  { %v1727_v35 = vpop.eup %1726  ;;  %v65_v36 = vmul.f32 0.0, %v1725_v32 }
  0x1f   :  { %v66_v37 = vmul.f32 0.0, %v1727_v35 }
  0x20   :  { %v2020_v38 = vadd.f32 %v67_v31, %v65_v36 }
  0x21   :  { %v2022_v39 = vadd.f32 %v68_v34, %v66_v37  ;;  %v1729_v40 = vpop.eup %1728 }
  0x22   :  { %1732 = vtanh.f32 %v2020_v38  ;;  %v1731_v41 = vpop.eup %1730 }
  0x23   :  { %1734 = vtanh.f32 %v2022_v39 }
  0x2c   :  { %v1733_v42 = vpop.eup %1732 }
  0x2d   :  { %v1735_v43 = vpop.eup %1734  ;;  %v73_v44 = vmul.f32 %v1733_v42, %v1729_v40 }
  0x2e   :  { %v74_v45 = vmul.f32 %v1735_v43, %v1731_v41 }
  0x2f   :  { %76 = vst.msk [vmem:[%s2465_s2] sm:$0xff] %vm75_vm1, %v73_v44 }
  0x30   :  { %77 = vst.msk [vmem:[%s2465_s2 + $0x8] sm:$0xff] %vm75_vm1, %v74_v45  ;;  %v1674_v46 = vpack.c.bf16 %v74_v45, %v73_v44 }
  0x32   :  { %1675 = vmatprep.subr.bf16.mxu0 %v1674_v46  ;;  %1702 = vmatprep.subr.bf16.mxu1 %v1674_v46 }
  0x33   :  { %1677 = vmatpush3.bf16.msra.mxu0 %v1674_v46  ;;  %1703 = vmatpush3.bf16.msra.mxu1 %v1674_v46 }
  0x36   :  { %1567 = vmatmul.mubr.msk.f32.vlgmr.msra.gmra.mrb[0].mxu0 %vm87_vm0, %v2037_v47  ;;  %1573 = vmatmul.mubr.msk.f32.vlgmr.msra.gmra.mrb[0].mxu1 %vm87_vm0, %v2042_v48 }
  0x37   :  { %1569 = vmatprep.mubr.msk.f32.mxu0 %vm87_vm0, %v2047_v49  ;;  %1575 = vmatprep.mubr.msk.f32.mxu1 %vm87_vm0, %v2052_v50 }
  0x3a   :  { %1570 = vmatmul.mubr.msk.f32.gmra.mrb[2].mxu0 %vm87_vm0, %v2063_v51  ;;  %1576 = vmatmul.mubr.msk.f32.gmra.mrb[2].mxu1 %vm87_vm0, %v2070_v52 }
  0x3b   :  { %1582 = vmatprep.mubr.msk.f32.mxu1 %vm87_vm0, %v1997_v8  ;;  %1598 = vmatprep.mubr.msk.f32.mxu0 %vm87_vm0, %v1997_v8 }
 0x109   :  { %v1568_v55 = vpop.f32.mrb[0].mxu0  ;;  %v1574_v56 = vpop.f32.mrb[0].mxu1 }
 0x10a   :  { %v218_v57 = vadd.f32 %v1568_v55, %v1325_v53  ;;  %v178_v58 = vpop.f32.mrb[1].mxu0  ;;  %v198_v59 = vpop.f32.mrb[1].mxu1  ;;  %v222_v17 = vadd.f32 %v1574_v56, %v1329_v12  ;;  %v1353_v12 = vld [vmem:[%s2463_s0 + $0xa8] sm:$0xff] }
 0x10b   :  { %v217_v60 = vadd.f32 %v1324_v54, %v178_v58  ;;  %v221_v18 = vadd.f32 %v1328_v14, %v198_v59  ;;  %v1348_v59 = vld [vmem:[%s2463_s0 + $0x80] sm:$0xff] }
 0x10c   :  { %v1341_v62 = vmul.f32 -1.442695, %v218_v57  ;;  %v1352_v14 = vld [vmem:[%s2463_s0 + $0xa0] sm:$0xff] }
 0x10d   :  { %v1340_v0 = vmul.f32 -1.442695, %v217_v60  ;;  %v1571_v1 = vpop.f32.mrb[2].mxu0  ;;  %v1577_v2 = vpop.f32.mrb[2].mxu1 }
 0x10e   :  { %1736 = vpow2.f32 %v1341_v62  ;;  %v220_v3 = vadd.f32 %v1571_v1, %v1327_v61  ;;  %v188_v4 = vpop.f32.mrb[3].mxu0  ;;  %v208_v6 = vpop.f32.mrb[3].mxu1  ;;  %v224_v15 = vadd.f32 %v1577_v2, %v1331_v5  ;;  %v1350_v2 = vld [vmem:[%s2463_s0 + $0x90] sm:$0xff] }
 0x10f   :  { %1738 = vpow2.f32 %v1340_v0  ;;  %v219_v7 = vadd.f32 %v1326_v63, %v188_v4  ;;  %v223_v16 = vadd.f32 %v1330_v10, %v208_v6  ;;  %v1351_v0 = vld [vmem:[%s2463_s0 + $0x98] sm:$0xff] }
 0x110   :  { %v1343_v11 = vmul.f32 -1.442695, %v220_v3  ;;  %v1345_v19 = vmul.f32 -1.442695, %v224_v15 }
 0x111   :  { %v1342_v13 = vmul.f32 -1.442695, %v219_v7  ;;  %v1344_v20 = vmul.f32 -1.442695, %v223_v16  ;;  %v1355_v16 = vld [vmem:[%s2463_s0 + $0xb8] sm:$0xff] }
 0x112   :  { %1740 = vpow2.f32 %v1343_v11 }
 0x113   :  { %1742 = vpow2.f32 %v1342_v13 }
 0x114   :  { %1744 = vtanh.f32 %v222_v17 }
 0x115   :  { %1746 = vtanh.f32 %v221_v18  ;;  %v1354_v18 = vld [vmem:[%s2463_s0 + $0xb0] sm:$0xff] }
 0x116   :  { %1748 = vpow2.f32 %v1345_v19 }
 0x117   :  { %1750 = vpow2.f32 %v1344_v20 }
 0x118   :  { %v1737_v21 = vpop.eup %1736 }
 0x119   :  { %v1739_v22 = vpop.eup %1738  ;;  %v232_v23 = vadd.f32 1.0, %v1737_v21 }
 0x11a   :  { %v231_v24 = vadd.f32 1.0, %v1739_v22 }
 0x11b   :  { %1752 = vrcp.f32 %v232_v23 }
 0x11c   :  { %v1741_v25 = vpop.eup %1740  ;;  %1754 = vrcp.f32 %v231_v24 }
 0x11d   :  { %v1743_v26 = vpop.eup %1742  ;;  %v244_v27 = vadd.f32 1.0, %v1741_v25 }
 0x11e   :  { %v243_v28 = vadd.f32 1.0, %v1743_v26  ;;  %v1745_v29 = vpop.eup %1744 }
 0x11f   :  { %1756 = vrcp.f32 %v244_v27  ;;  %v1747_v30 = vpop.eup %1746 }
 0x120   :  { %1758 = vrcp.f32 %v243_v28  ;;  %v1749_v31 = vpop.eup %1748 }
 0x121   :  { %v1751_v32 = vpop.eup %1750  ;;  %v258_v37 = vadd.f32 1.0, %v1749_v31 }
 0x122   :  { %v257_v41 = vadd.f32 1.0, %v1751_v32 }
 0x123   :  { %1760 = vrcp.f32 %v258_v37 }
 0x124   :  { %1762 = vrcp.f32 %v257_v41 }
 0x125   :  { %v1753_v33 = vpop.eup %1752 }
 0x126   :  { %v1755_v34 = vpop.eup %1754  ;;  %v266_v35 = vmul.f32 %v1753_v33, %v1745_v29 }
 0x127   :  { %v265_v36 = vmul.f32 %v1755_v34, %v1747_v30 }
 0x129   :  { %v1757_v40 = vpop.eup %1756 }
 0x12a   :  { %v1759_v42 = vpop.eup %1758  ;;  %v264_v43 = vmul.f32 %v1757_v40, %v2022_v39  ;;  %v1349_v39 = vld [vmem:[%s2463_s0 + $0x88] sm:$0xff] }
 0x12b   :  { %v263_v44 = vmul.f32 %v1759_v42, %v2020_v38 }
 0x12c   :  { %v2106_v45 = vadd.f32 %v266_v35, %v264_v43 }
 0x12d   :  { %v2108_v46 = vadd.f32 %v265_v36, %v263_v44  ;;  %v1761_v53 = vpop.eup %1760 }
 0x12e   :  { %1764 = vtanh.f32 %v2106_v45  ;;  %v1763_v54 = vpop.eup %1762 }
 0x12f   :  { %1766 = vtanh.f32 %v2108_v46 }
 0x138   :  { %v1765_v55 = vpop.eup %1764 }
 0x139   :  { %v1767_v56 = vpop.eup %1766  ;;  %v272_v57 = vmul.f32 %v1765_v55, %v1761_v53 }
 0x13a   :  { %v271_v58 = vmul.f32 %v1767_v56, %v1763_v54 }
 0x13b   :  { %1347 = vst.msk [vmem:[%s2465_s2 + $0x18] sm:$0xff] %vm75_vm1, %v272_v57 }
 0x13c   :  { %1346 = vst.msk [vmem:[%s2465_s2 + $0x10] sm:$0xff] %vm75_vm1, %v271_v58  ;;  %v1678_v38 = vpack.c.bf16 %v272_v57, %v271_v58 }
 0x13e   :  { %1679 = vmatprep.subr.bf16.mxu1 %v1678_v38 }
 0x13f   :  { %1681 = vmatpush3.bf16.msra.mxu1 %v1678_v38 }
 0x142   :  { %1583 = vmatmul.mubr.msk.f32.vlgmr.msra.gmra.mrb[4].mxu1 %vm87_vm0, %v2037_v47 }
 0x143   :  { %1585 = vmatprep.mubr.msk.f32.mxu1 %vm87_vm0, %v2047_v49 }
 0x146   :  { %1586 = vmatmul.mubr.msk.f32.gmra.mrb[6].mxu1 %vm87_vm0, %v2063_v51 }
 0x147   :  { %1588 = vmatprep.mubr.msk.f32.mxu1 %vm87_vm0, %v2004_v9 }
 0x14a   :  { %1589 = vmatmul.mubr.msk.f32.gmra.mrb[8].mxu1 %vm87_vm0, %v2042_v48 }
 0x14b   :  { %1591 = vmatprep.mubr.msk.f32.mxu1 %vm87_vm0, %v2052_v50 }
 0x14e   :  { %1592 = vmatmul.mubr.msk.f32.gmra.mrb[10].mxu1 %vm87_vm0, %v2070_v52 }
 0x14f   :  { %1614 = vmatprep.mubr.msk.f32.mxu1 %vm87_vm0, %v1997_v8 }
 0x215   :  { %v1584_v60 = vpop.f32.mrb[4].mxu1 }
 0x216   :  { %v391_v61 = vadd.f32 %v1584_v60, %v1349_v39  ;;  %v351_v62 = vpop.f32.mrb[5].mxu1 }
 0x217   :  { %v390_v63 = vadd.f32 %v1348_v59, %v351_v62 }
 0x218   :  { %v1365_v1 = vmul.f32 -1.442695, %v391_v61 }
 0x219   :  { %v1364_v3 = vmul.f32 -1.442695, %v390_v63  ;;  %v1587_v4 = vpop.f32.mrb[6].mxu1 }
 0x21a   :  { %1768 = vpow2.f32 %v1365_v1  ;;  %v393_v5 = vadd.f32 %v1587_v4, %v1351_v0  ;;  %v361_v6 = vpop.f32.mrb[7].mxu1  ;;  %v1372_v0 = vld [vmem:[%s2463_s0 + $0xc0] sm:$0xff] }
 0x21b   :  { %1770 = vpow2.f32 %v1364_v3  ;;  %v392_v7 = vadd.f32 %v1350_v2, %v361_v6 }
 0x21c   :  { %v1367_v10 = vmul.f32 -1.442695, %v393_v5  ;;  %v1375_v5 = vld [vmem:[%s2463_s0 + $0xd8] sm:$0xff] }
 0x21d   :  { %v1366_v11 = vmul.f32 -1.442695, %v392_v7  ;;  %v1590_v13 = vpop.f32.mrb[8].mxu1  ;;  %v1374_v7 = vld [vmem:[%s2463_s0 + $0xd0] sm:$0xff] }
 0x21e   :  { %1772 = vpow2.f32 %v1367_v10  ;;  %v371_v15 = vpop.f32.mrb[9].mxu1  ;;  %v395_v17 = vadd.f32 %v1590_v13, %v1353_v12 }
 0x21f   :  { %1774 = vpow2.f32 %v1366_v11  ;;  %v394_v19 = vadd.f32 %v1352_v14, %v371_v15 }
 0x220   :  { %1776 = vtanh.f32 %v395_v17  ;;  %v1377_v17 = vld [vmem:[%s2463_s0 + $0xe8] sm:$0xff] }
 0x221   :  { %v1593_v20 = vpop.f32.mrb[10].mxu1  ;;  %1778 = vtanh.f32 %v394_v19  ;;  %v1376_v19 = vld [vmem:[%s2463_s0 + $0xe0] sm:$0xff] }
 0x222   :  { %v397_v21 = vadd.f32 %v1593_v20, %v1355_v16  ;;  %v381_v22 = vpop.f32.mrb[11].mxu1 }
 0x223   :  { %v396_v23 = vadd.f32 %v1354_v18, %v381_v22 }
 0x224   :  { %v1769_v24 = vpop.eup %1768  ;;  %v1369_v25 = vmul.f32 -1.442695, %v397_v21  ;;  %v1379_v21 = vld [vmem:[%s2463_s0 + $0xf8] sm:$0xff] }
 0x225   :  { %v1771_v26 = vpop.eup %1770  ;;  %v405_v27 = vadd.f32 1.0, %v1769_v24  ;;  %v1368_v28 = vmul.f32 -1.442695, %v396_v23  ;;  %v1378_v23 = vld [vmem:[%s2463_s0 + $0xf0] sm:$0xff] }
 0x226   :  { %v404_v29 = vadd.f32 1.0, %v1771_v26  ;;  %1780 = vpow2.f32 %v1369_v25 }
 0x227   :  { %1782 = vrcp.f32 %v405_v27 }
 0x228   :  { %v1773_v30 = vpop.eup %1772  ;;  %1784 = vrcp.f32 %v404_v29 }
 0x229   :  { %v1775_v31 = vpop.eup %1774  ;;  %v417_v32 = vadd.f32 1.0, %v1773_v30  ;;  %1786 = vpow2.f32 %v1368_v28 }
 0x22a   :  { %v416_v33 = vadd.f32 1.0, %v1775_v31  ;;  %v1777_v34 = vpop.eup %1776 }
 0x22b   :  { %1788 = vrcp.f32 %v417_v32  ;;  %v1779_v35 = vpop.eup %1778 }
 0x22c   :  { %1790 = vrcp.f32 %v416_v33 }
 0x230   :  { %v1781_v36 = vpop.eup %1780 }
 0x231   :  { %v1783_v37 = vpop.eup %1782  ;;  %v431_v44 = vadd.f32 1.0, %v1781_v36 }
 0x232   :  { %v1785_v40 = vpop.eup %1784  ;;  %v439_v41 = vmul.f32 %v1783_v37, %v1777_v34 }
 0x233   :  { %v1787_v42 = vpop.eup %1786  ;;  %v438_v43 = vmul.f32 %v1785_v40, %v1779_v35  ;;  %1792 = vrcp.f32 %v431_v44 }
 0x234   :  { %v430_v54 = vadd.f32 1.0, %v1787_v42 }
 0x235   :  { %v1789_v53 = vpop.eup %1788 }
 0x236   :  { %v1791_v55 = vpop.eup %1790  ;;  %v437_v56 = vmul.f32 %v1789_v53, %v2106_v45  ;;  %1794 = vrcp.f32 %v430_v54 }
 0x237   :  { %v436_v57 = vmul.f32 %v1791_v55, %v2108_v46  ;;  %v1373_v46 = vld [vmem:[%s2463_s0 + $0xc8] sm:$0xff] }
 0x238   :  { %v2162_v58 = vadd.f32 %v439_v41, %v437_v56 }
 0x239   :  { %v2164_v38 = vadd.f32 %v438_v43, %v436_v57 }
 0x23a   :  { %1796 = vtanh.f32 %v2162_v58 }
 0x23b   :  { %1798 = vtanh.f32 %v2164_v38 }
 0x23d   :  { %v1793_v39 = vpop.eup %1792 }
 0x240   :  { %v1795_v59 = vpop.eup %1794 }
 0x244   :  { %v1797_v60 = vpop.eup %1796 }
 0x245   :  { %v1799_v61 = vpop.eup %1798  ;;  %v445_v62 = vmul.f32 %v1797_v60, %v1793_v39 }
 0x246   :  { %v444_v63 = vmul.f32 %v1799_v61, %v1795_v59 }
 0x247   :  { %1371 = vst.msk [vmem:[%s2465_s2 + $0x28] sm:$0xff] %vm75_vm1, %v445_v62 }
 0x248   :  { %1370 = vst.msk [vmem:[%s2465_s2 + $0x20] sm:$0xff] %vm75_vm1, %v444_v63  ;;  %v1682_v45 = vpack.c.bf16 %v445_v62, %v444_v63 }
 0x24a   :  { %1683 = vmatprep.subr.bf16.mxu0 %v1682_v45 }
 0x24b   :  { %1685 = vmatpush3.bf16.msra.mxu0 %v1682_v45 }
 0x24e   :  { %1599 = vmatmul.mubr.msk.f32.vlgmr.msra.gmra.mrb[4].mxu0 %vm87_vm0, %v2037_v47 }
 0x24f   :  { %1601 = vmatprep.mubr.msk.f32.mxu0 %vm87_vm0, %v2047_v49 }
 0x252   :  { %1602 = vmatmul.mubr.msk.f32.gmra.mrb[6].mxu0 %vm87_vm0, %v2063_v51 }
 0x253   :  { %1604 = vmatprep.mubr.msk.f32.mxu0 %vm87_vm0, %v2004_v9 }
 0x256   :  { %1605 = vmatmul.mubr.msk.f32.gmra.mrb[8].mxu0 %vm87_vm0, %v2042_v48 }
 0x257   :  { %1607 = vmatprep.mubr.msk.f32.mxu0 %vm87_vm0, %v2052_v50 }
 0x25a   :  { %1608 = vmatmul.mubr.msk.f32.gmra.mrb[10].mxu0 %vm87_vm0, %v2070_v52 }
 0x25b   :  { %1630 = vmatprep.mubr.msk.f32.mxu0 %vm87_vm0, %v1997_v8 }
 0x321   :  { %v1600_v1 = vpop.f32.mrb[4].mxu0 }
 0x322   :  { %v564_v2 = vadd.f32 %v1600_v1, %v1373_v46  ;;  %v524_v3 = vpop.f32.mrb[5].mxu0 }
 0x323   :  { %v563_v4 = vadd.f32 %v1372_v0, %v524_v3 }
 0x324   :  { %v1389_v6 = vmul.f32 -1.442695, %v564_v2 }
 0x325   :  { %v1388_v10 = vmul.f32 -1.442695, %v563_v4  ;;  %v1603_v11 = vpop.f32.mrb[6].mxu0 }
 0x326   :  { %1800 = vpow2.f32 %v1389_v6  ;;  %v566_v12 = vadd.f32 %v1603_v11, %v1375_v5  ;;  %v534_v13 = vpop.f32.mrb[7].mxu0  ;;  %v1396_v5 = vld [vmem:[%s2463_s0 + $0x100] sm:$0xff] }
 0x327   :  { %1802 = vpow2.f32 %v1388_v10  ;;  %v565_v14 = vadd.f32 %v1374_v7, %v534_v13 }
 0x328   :  { %v1391_v15 = vmul.f32 -1.442695, %v566_v12  ;;  %v1399_v12 = vld [vmem:[%s2463_s0 + $0x118] sm:$0xff] }
 0x329   :  { %v1390_v16 = vmul.f32 -1.442695, %v565_v14  ;;  %v1606_v18 = vpop.f32.mrb[8].mxu0  ;;  %v1398_v14 = vld [vmem:[%s2463_s0 + $0x110] sm:$0xff] }
 0x32a   :  { %1804 = vpow2.f32 %v1391_v15  ;;  %v544_v20 = vpop.f32.mrb[9].mxu0  ;;  %v568_v22 = vadd.f32 %v1606_v18, %v1377_v17 }
 0x32b   :  { %1806 = vpow2.f32 %v1390_v16  ;;  %v567_v24 = vadd.f32 %v1376_v19, %v544_v20 }
 0x32c   :  { %1808 = vtanh.f32 %v568_v22  ;;  %v1401_v22 = vld [vmem:[%s2463_s0 + $0x128] sm:$0xff] }
 0x32d   :  { %v1609_v25 = vpop.f32.mrb[10].mxu0  ;;  %1810 = vtanh.f32 %v567_v24  ;;  %v1400_v24 = vld [vmem:[%s2463_s0 + $0x120] sm:$0xff] }
 0x32e   :  { %v570_v26 = vadd.f32 %v1609_v25, %v1379_v21  ;;  %v554_v27 = vpop.f32.mrb[11].mxu0 }
 0x32f   :  { %v569_v28 = vadd.f32 %v1378_v23, %v554_v27 }
 0x330   :  { %v1801_v29 = vpop.eup %1800  ;;  %v1393_v30 = vmul.f32 -1.442695, %v570_v26  ;;  %v1403_v26 = vld [vmem:[%s2463_s0 + $0x138] sm:$0xff] }
 0x331   :  { %v1803_v31 = vpop.eup %1802  ;;  %v578_v32 = vadd.f32 1.0, %v1801_v29  ;;  %v1392_v33 = vmul.f32 -1.442695, %v569_v28  ;;  %v1402_v28 = vld [vmem:[%s2463_s0 + $0x130] sm:$0xff] }
 0x332   :  { %v577_v34 = vadd.f32 1.0, %v1803_v31  ;;  %1812 = vpow2.f32 %v1393_v30 }
 0x333   :  { %1814 = vrcp.f32 %v578_v32 }
 0x334   :  { %v1805_v35 = vpop.eup %1804  ;;  %1816 = vrcp.f32 %v577_v34 }
 0x335   :  { %v1807_v36 = vpop.eup %1806  ;;  %v590_v37 = vadd.f32 1.0, %v1805_v35  ;;  %1818 = vpow2.f32 %v1392_v33 }
 0x336   :  { %v589_v40 = vadd.f32 1.0, %v1807_v36  ;;  %v1809_v41 = vpop.eup %1808 }
 0x337   :  { %1820 = vrcp.f32 %v590_v37  ;;  %v1811_v42 = vpop.eup %1810 }
 0x338   :  { %1822 = vrcp.f32 %v589_v40 }
 0x33c   :  { %v1813_v43 = vpop.eup %1812 }
 0x33d   :  { %v1815_v44 = vpop.eup %1814  ;;  %v604_v57 = vadd.f32 1.0, %v1813_v43 }
 0x33e   :  { %v1817_v53 = vpop.eup %1816  ;;  %v612_v54 = vmul.f32 %v1815_v44, %v1809_v41 }
 0x33f   :  { %v1819_v55 = vpop.eup %1818  ;;  %v611_v56 = vmul.f32 %v1817_v53, %v1811_v42  ;;  %1824 = vrcp.f32 %v604_v57 }
 0x340   :  { %v603_v59 = vadd.f32 1.0, %v1819_v55 }
 0x341   :  { %v1821_v39 = vpop.eup %1820 }
 0x342   :  { %v1823_v60 = vpop.eup %1822  ;;  %v610_v61 = vmul.f32 %v1821_v39, %v2162_v58  ;;  %1826 = vrcp.f32 %v603_v59 }
 0x343   :  { %v609_v62 = vmul.f32 %v1823_v60, %v2164_v38  ;;  %v1397_v38 = vld [vmem:[%s2463_s0 + $0x108] sm:$0xff] }
 0x344   :  { %v2218_v63 = vadd.f32 %v612_v54, %v610_v61 }
 0x345   :  { %v2220_v45 = vadd.f32 %v611_v56, %v609_v62 }
 0x346   :  { %1828 = vtanh.f32 %v2218_v63 }
 0x347   :  { %1830 = vtanh.f32 %v2220_v45 }
 0x349   :  { %v1825_v46 = vpop.eup %1824 }
 0x34c   :  { %v1827_v0 = vpop.eup %1826 }
 0x350   :  { %v1829_v1 = vpop.eup %1828 }
 0x351   :  { %v1831_v2 = vpop.eup %1830  ;;  %v618_v3 = vmul.f32 %v1829_v1, %v1825_v46 }
 0x352   :  { %v617_v4 = vmul.f32 %v1831_v2, %v1827_v0 }
 0x353   :  { %1395 = vst.msk [vmem:[%s2465_s2 + $0x38] sm:$0xff] %vm75_vm1, %v618_v3 }
 0x354   :  { %1394 = vst.msk [vmem:[%s2465_s2 + $0x30] sm:$0xff] %vm75_vm1, %v617_v4  ;;  %v1686_v58 = vpack.c.bf16 %v618_v3, %v617_v4 }
 0x356   :  { %1687 = vmatprep.subr.bf16.mxu1 %v1686_v58 }
 0x357   :  { %1689 = vmatpush3.bf16.msra.mxu1 %v1686_v58 }
 0x35a   :  { %1615 = vmatmul.mubr.msk.f32.vlgmr.msra.gmra.mrb[12].mxu1 %vm87_vm0, %v2037_v47 }
 0x35b   :  { %1617 = vmatprep.mubr.msk.f32.mxu1 %vm87_vm0, %v2047_v49 }
 0x35e   :  { %1618 = vmatmul.mubr.msk.f32.gmra.mrb[14].mxu1 %vm87_vm0, %v2063_v51 }
 0x35f   :  { %1620 = vmatprep.mubr.msk.f32.mxu1 %vm87_vm0, %v2004_v9 }
 0x362   :  { %1621 = vmatmul.mubr.msk.f32.gmra.mrb[16].mxu1 %vm87_vm0, %v2042_v48 }
 0x363   :  { %1623 = vmatprep.mubr.msk.f32.mxu1 %vm87_vm0, %v2052_v50 }
 0x366   :  { %1624 = vmatmul.mubr.msk.f32.gmra.mrb[18].mxu1 %vm87_vm0, %v2070_v52 }
 0x367   :  { %1646 = vmatprep.mubr.msk.f32.mxu1 %vm87_vm0, %v1997_v8 }
 0x42d   :  { %v1616_v6 = vpop.f32.mrb[12].mxu1 }
 0x42e   :  { %v737_v7 = vadd.f32 %v1616_v6, %v1397_v38  ;;  %v697_v10 = vpop.f32.mrb[13].mxu1 }
 0x42f   :  { %v736_v11 = vadd.f32 %v1396_v5, %v697_v10 }
 0x430   :  { %v1413_v13 = vmul.f32 -1.442695, %v737_v7 }
 0x431   :  { %v1412_v15 = vmul.f32 -1.442695, %v736_v11  ;;  %v1619_v16 = vpop.f32.mrb[14].mxu1 }
 0x432   :  { %1832 = vpow2.f32 %v1413_v13  ;;  %v739_v17 = vadd.f32 %v1619_v16, %v1399_v12  ;;  %v707_v18 = vpop.f32.mrb[15].mxu1  ;;  %v1423_v16 = vld [vmem:[%s2463_s0 + $0x158] sm:$0xff] }
 0x433   :  { %1834 = vpow2.f32 %v1412_v15  ;;  %v738_v19 = vadd.f32 %v1398_v14, %v707_v18 }
 0x434   :  { %v1415_v20 = vmul.f32 -1.442695, %v739_v17 }
 0x435   :  { %v1414_v21 = vmul.f32 -1.442695, %v738_v19  ;;  %v1622_v23 = vpop.f32.mrb[16].mxu1 }
 0x436   :  { %1836 = vpow2.f32 %v1415_v20  ;;  %v717_v25 = vpop.f32.mrb[17].mxu1  ;;  %v741_v27 = vadd.f32 %v1622_v23, %v1401_v22 }
 0x437   :  { %1838 = vpow2.f32 %v1414_v21  ;;  %v740_v29 = vadd.f32 %v1400_v24, %v717_v25  ;;  %v1425_v25 = vld [vmem:[%s2463_s0 + $0x168] sm:$0xff] }
 0x438   :  { %1840 = vtanh.f32 %v741_v27  ;;  %v1424_v27 = vld [vmem:[%s2463_s0 + $0x160] sm:$0xff] }
 0x439   :  { %v1625_v30 = vpop.f32.mrb[18].mxu1  ;;  %1842 = vtanh.f32 %v740_v29  ;;  %v1427_v29 = vld [vmem:[%s2463_s0 + $0x178] sm:$0xff] }
 0x43a   :  { %v743_v31 = vadd.f32 %v1625_v30, %v1403_v26  ;;  %v727_v32 = vpop.f32.mrb[19].mxu1 }
 0x43b   :  { %v742_v33 = vadd.f32 %v1402_v28, %v727_v32 }
 0x43c   :  { %v1833_v34 = vpop.eup %1832  ;;  %v1417_v35 = vmul.f32 -1.442695, %v743_v31  ;;  %v1426_v31 = vld [vmem:[%s2463_s0 + $0x170] sm:$0xff] }
 0x43d   :  { %v1835_v36 = vpop.eup %1834  ;;  %v751_v37 = vadd.f32 1.0, %v1833_v34  ;;  %v1416_v40 = vmul.f32 -1.442695, %v742_v33 }
 0x43e   :  { %v750_v41 = vadd.f32 1.0, %v1835_v36  ;;  %1844 = vpow2.f32 %v1417_v35 }
 0x43f   :  { %1846 = vrcp.f32 %v751_v37 }
 0x440   :  { %v1837_v42 = vpop.eup %1836  ;;  %1848 = vrcp.f32 %v750_v41 }
 0x441   :  { %v1839_v43 = vpop.eup %1838  ;;  %v763_v44 = vadd.f32 1.0, %v1837_v42  ;;  %1850 = vpow2.f32 %v1416_v40 }
 0x442   :  { %v762_v53 = vadd.f32 1.0, %v1839_v43  ;;  %v1841_v54 = vpop.eup %1840 }
 0x443   :  { %1852 = vrcp.f32 %v763_v44  ;;  %v1843_v55 = vpop.eup %1842 }
 0x444   :  { %1854 = vrcp.f32 %v762_v53 }
 0x448   :  { %v1845_v56 = vpop.eup %1844 }
 0x449   :  { %v1847_v57 = vpop.eup %1846  ;;  %v777_v62 = vadd.f32 1.0, %v1845_v56 }
 0x44a   :  { %v1849_v39 = vpop.eup %1848  ;;  %v785_v59 = vmul.f32 %v1847_v57, %v1841_v54 }
 0x44b   :  { %v1851_v60 = vpop.eup %1850  ;;  %v784_v61 = vmul.f32 %v1849_v39, %v1843_v55  ;;  %1856 = vrcp.f32 %v777_v62 }
 0x44c   :  { %v776_v0 = vadd.f32 1.0, %v1851_v60 }
 0x44d   :  { %v1853_v46 = vpop.eup %1852 }
 0x44e   :  { %v1855_v1 = vpop.eup %1854  ;;  %v783_v2 = vmul.f32 %v1853_v46, %v2218_v63  ;;  %1858 = vrcp.f32 %v776_v0 }
 0x44f   :  { %v782_v3 = vmul.f32 %v1855_v1, %v2220_v45  ;;  %v1421_v45 = vld [vmem:[%s2463_s0 + $0x148] sm:$0xff] }
 0x450   :  { %v2274_v4 = vadd.f32 %v785_v59, %v783_v2 }
 0x451   :  { %v2276_v58 = vadd.f32 %v784_v61, %v782_v3 }
 0x452   :  { %1860 = vtanh.f32 %v2274_v4 }
 0x453   :  { %1862 = vtanh.f32 %v2276_v58 }
 0x455   :  { %v1857_v38 = vpop.eup %1856 }
 0x458   :  { %v1859_v5 = vpop.eup %1858 }
 0x45c   :  { %v1861_v6 = vpop.eup %1860 }
 0x45d   :  { %v1863_v7 = vpop.eup %1862  ;;  %v791_v10 = vmul.f32 %v1861_v6, %v1857_v38 }
 0x45e   :  { %v790_v11 = vmul.f32 %v1863_v7, %v1859_v5 }
 0x45f   :  { %1419 = vst.msk [vmem:[%s2465_s2 + $0x48] sm:$0xff] %vm75_vm1, %v791_v10 }
 0x460   :  { %1418 = vst.msk [vmem:[%s2465_s2 + $0x40] sm:$0xff] %vm75_vm1, %v790_v11  ;;  %v1690_v63 = vpack.c.bf16 %v791_v10, %v790_v11 }
 0x462   :  { %1691 = vmatprep.subr.bf16.mxu0 %v1690_v63 }
 0x463   :  { %1693 = vmatpush3.bf16.msra.mxu0 %v1690_v63 }
 0x466   :  { %1631 = vmatmul.mubr.msk.f32.vlgmr.msra.gmra.mrb[12].mxu0 %vm87_vm0, %v2037_v47 }
 0x467   :  { %1633 = vmatprep.mubr.msk.f32.mxu0 %vm87_vm0, %v2047_v49 }
 0x46a   :  { %1634 = vmatmul.mubr.msk.f32.gmra.mrb[14].mxu0 %vm87_vm0, %v2063_v51 }
 0x46b   :  { %1636 = vmatprep.mubr.msk.f32.mxu0 %vm87_vm0, %v2004_v9  ;;  %v1420_v9 = vld [vmem:[%s2463_s0 + $0x140] sm:$0xff] }
 0x46e   :  { %1637 = vmatmul.mubr.msk.f32.gmra.mrb[16].mxu0 %vm87_vm0, %v2042_v48 }
 0x46f   :  { %1639 = vmatprep.mubr.msk.f32.mxu0 %vm87_vm0, %v2052_v50 }
 0x472   :  { %1640 = vmatmul.mubr.msk.f32.gmra.mrb[18].mxu0 %vm87_vm0, %v2070_v52 }
 0x473   :  { %1662 = vmatprep.mubr.msk.f32.mxu0 %vm87_vm0, %v1997_v8  ;;  %v1422_v8 = vld [vmem:[%s2463_s0 + $0x150] sm:$0xff] }
 0x539   :  { %v1632_v12 = vpop.f32.mrb[12].mxu0 }
 0x53a   :  { %v910_v13 = vadd.f32 %v1632_v12, %v1421_v45  ;;  %v870_v14 = vpop.f32.mrb[13].mxu0 }
 0x53b   :  { %v909_v15 = vadd.f32 %v1420_v9, %v870_v14 }
 0x53c   :  { %v1437_v17 = vmul.f32 -1.442695, %v910_v13 }
 0x53d   :  { %v1436_v18 = vmul.f32 -1.442695, %v909_v15  ;;  %v1635_v19 = vpop.f32.mrb[14].mxu0 }
 0x53e   :  { %1864 = vpow2.f32 %v1437_v17  ;;  %v912_v20 = vadd.f32 %v1635_v19, %v1423_v16  ;;  %v880_v21 = vpop.f32.mrb[15].mxu0 }
 0x53f   :  { %1866 = vpow2.f32 %v1436_v18  ;;  %v911_v22 = vadd.f32 %v1422_v8, %v880_v21 }
 0x540   :  { %v1439_v23 = vmul.f32 -1.442695, %v912_v20 }
 0x541   :  { %v1438_v24 = vmul.f32 -1.442695, %v911_v22  ;;  %v1638_v26 = vpop.f32.mrb[16].mxu0 }
 0x542   :  { %1868 = vpow2.f32 %v1439_v23  ;;  %v890_v28 = vpop.f32.mrb[17].mxu0  ;;  %v914_v30 = vadd.f32 %v1638_v26, %v1425_v25  ;;  %v1449_v23 = vld [vmem:[%s2463_s0 + $0x1a8] sm:$0xff]  ;;  %v1448_v25 = vld [vmem:[%s2463_s0 + $0x1a0] sm:$0xff] }
 0x543   :  { %1870 = vpow2.f32 %v1438_v24  ;;  %v913_v32 = vadd.f32 %v1424_v27, %v890_v28  ;;  %v1451_v27 = vld [vmem:[%s2463_s0 + $0x1b8] sm:$0xff] }
 0x544   :  { %1872 = vtanh.f32 %v914_v30 }
 0x545   :  { %v1641_v33 = vpop.f32.mrb[18].mxu0  ;;  %1874 = vtanh.f32 %v913_v32 }
 0x546   :  { %v916_v34 = vadd.f32 %v1641_v33, %v1427_v29  ;;  %v900_v35 = vpop.f32.mrb[19].mxu0  ;;  %v1450_v29 = vld [vmem:[%s2463_s0 + $0x1b0] sm:$0xff] }
 0x547   :  { %v915_v36 = vadd.f32 %v1426_v31, %v900_v35 }
 0x548   :  { %v1865_v37 = vpop.eup %1864  ;;  %v1441_v40 = vmul.f32 -1.442695, %v916_v34 }
 0x549   :  { %v1867_v41 = vpop.eup %1866  ;;  %v924_v42 = vadd.f32 1.0, %v1865_v37  ;;  %v1440_v43 = vmul.f32 -1.442695, %v915_v36 }
 0x54a   :  { %v923_v44 = vadd.f32 1.0, %v1867_v41  ;;  %1876 = vpow2.f32 %v1441_v40 }
 0x54b   :  { %1878 = vrcp.f32 %v924_v42 }
 0x54c   :  { %v1869_v53 = vpop.eup %1868  ;;  %1880 = vrcp.f32 %v923_v44 }
 0x54d   :  { %v1871_v54 = vpop.eup %1870  ;;  %v936_v55 = vadd.f32 1.0, %v1869_v53  ;;  %1882 = vpow2.f32 %v1440_v43 }
 0x54e   :  { %v935_v56 = vadd.f32 1.0, %v1871_v54  ;;  %v1873_v57 = vpop.eup %1872 }
 0x54f   :  { %1884 = vrcp.f32 %v936_v55  ;;  %v1875_v39 = vpop.eup %1874 }
 0x550   :  { %1886 = vrcp.f32 %v935_v56 }
 0x554   :  { %v1877_v59 = vpop.eup %1876 }
 0x555   :  { %v1879_v60 = vpop.eup %1878  ;;  %v950_v1 = vadd.f32 1.0, %v1877_v59 }
 0x556   :  { %v1881_v61 = vpop.eup %1880  ;;  %v958_v62 = vmul.f32 %v1879_v60, %v1873_v57 }
 0x557   :  { %v1883_v46 = vpop.eup %1882  ;;  %v957_v0 = vmul.f32 %v1881_v61, %v1875_v39  ;;  %1888 = vrcp.f32 %v950_v1 }
 0x558   :  { %v949_v3 = vadd.f32 1.0, %v1883_v46 }
 0x559   :  { %v1885_v2 = vpop.eup %1884 }
 0x55a   :  { %v1887_v38 = vpop.eup %1886  ;;  %v956_v5 = vmul.f32 %v1885_v2, %v2274_v4  ;;  %1890 = vrcp.f32 %v949_v3 }
 0x55b   :  { %v955_v6 = vmul.f32 %v1887_v38, %v2276_v58  ;;  %v2353_v58 = vld [vmem:[%s2464_s1 + $0x20] sm:$0xff] }
 0x55c   :  { %v2330_v7 = vadd.f32 %v958_v62, %v956_v5 }
 0x55d   :  { %v2332_v10 = vadd.f32 %v957_v0, %v955_v6 }
 0x55e   :  { %1892 = vtanh.f32 %v2330_v7 }
 0x55f   :  { %1894 = vtanh.f32 %v2332_v10 }
 0x561   :  { %v1889_v11 = vpop.eup %1888 }
 0x564   :  { %v1891_v63 = vpop.eup %1890 }
 0x568   :  { %v1893_v45 = vpop.eup %1892 }
 0x569   :  { %v1895_v9 = vpop.eup %1894  ;;  %v964_v12 = vmul.f32 %v1893_v45, %v1889_v11 }
 0x56a   :  { %v963_v13 = vmul.f32 %v1895_v9, %v1891_v63 }
 0x56b   :  { %1443 = vst.msk [vmem:[%s2465_s2 + $0x58] sm:$0xff] %vm75_vm1, %v964_v12 }
 0x56c   :  { %1442 = vst.msk [vmem:[%s2465_s2 + $0x50] sm:$0xff] %vm75_vm1, %v963_v13  ;;  %v1694_v4 = vpack.c.bf16 %v964_v12, %v963_v13 }
 0x56e   :  { %1695 = vmatprep.subr.bf16.mxu1 %v1694_v4 }
 0x56f   :  { %1697 = vmatpush3.bf16.msra.mxu1 %v1694_v4  ;;  %v1962_v4 = vld [vmem:[%s2464_s1 + $0x10] sm:$0xff] }
 0x572   :  { %1647 = vmatmul.mubr.msk.f32.vlgmr.msra.gmra.mrb[20].mxu1 %vm87_vm0, %v2037_v47  ;;  %v1445_v47 = vld [vmem:[%s2463_s0 + $0x188] sm:$0xff] }
 0x573   :  { %1649 = vmatprep.mubr.msk.f32.mxu1 %vm87_vm0, %v2047_v49  ;;  %v1444_v49 = vld [vmem:[%s2463_s0 + $0x180] sm:$0xff] }
 0x576   :  { %1650 = vmatmul.mubr.msk.f32.gmra.mrb[22].mxu1 %vm87_vm0, %v2063_v51 }
 0x577   :  { %1652 = vmatprep.mubr.msk.f32.mxu1 %vm87_vm0, %v2353_v58 }
 0x57a   :  { %1653 = vmatmul.mubr.msk.f32.gmra.mrb[24].mxu1 %vm87_vm0, %v2042_v48  ;;  %v1447_v48 = vld [vmem:[%s2463_s0 + $0x198] sm:$0xff] }
 0x57b   :  { %1655 = vmatprep.mubr.msk.f32.mxu1 %vm87_vm0, %v2052_v50 }
 0x57e   :  { %1656 = vmatmul.mubr.msk.f32.gmra.mrb[26].mxu1 %vm87_vm0, %v2070_v52  ;;  %v1446_v52 = vld [vmem:[%s2463_s0 + $0x190] sm:$0xff] }
 0x645   :  { %v1648_v51 = vpop.f32.mrb[20].mxu1 }
 0x646   :  { %v1083_v14 = vadd.f32 %v1648_v51, %v1445_v47  ;;  %v1043_v15 = vpop.f32.mrb[21].mxu1  ;;  %v1963_v47 = vld [vmem:[%s2464_s1 + $0x18] sm:$0xff]  ;;  %v1965_v51 = vld [vmem:[%s2464_s1 + $0x30] sm:$0xff] }
 0x647   :  { %v1082_v16 = vadd.f32 %v1444_v49, %v1043_v15  ;;  %v1964_v49 = vld [vmem:[%s2464_s1 + $0x28] sm:$0xff]  ;;  %v1468_v15 = vld [vmem:[%s2463_s0 + $0x1c0] sm:$0xff] }
 0x648   :  { %v1461_v50 = vmul.f32 -1.442695, %v1083_v14  ;;  %v1966_v14 = vld [vmem:[%s2464_s1 + $0x38] sm:$0xff] }
 0x649   :  { %v1460_v17 = vmul.f32 -1.442695, %v1082_v16  ;;  %v1651_v8 = vpop.f32.mrb[22].mxu1 }
 0x64a   :  { %1896 = vpow2.f32 %v1461_v50  ;;  %v1085_v18 = vadd.f32 %v1651_v8, %v1447_v48  ;;  %v1053_v19 = vpop.f32.mrb[23].mxu1 }
 0x64b   :  { %1898 = vpow2.f32 %v1460_v17  ;;  %v1084_v20 = vadd.f32 %v1446_v52, %v1053_v19  ;;  %v1471_v17 = vld [vmem:[%s2463_s0 + $0x1d8] sm:$0xff] }
 0x64c   :  { %v1463_v21 = vmul.f32 -1.442695, %v1085_v18  ;;  %v1470_v18 = vld [vmem:[%s2463_s0 + $0x1d0] sm:$0xff] }
 0x64d   :  { %v1462_v22 = vmul.f32 -1.442695, %v1084_v20  ;;  %v1654_v24 = vpop.f32.mrb[24].mxu1 }
 0x64e   :  { %1900 = vpow2.f32 %v1463_v21  ;;  %v1063_v26 = vpop.f32.mrb[25].mxu1  ;;  %v1087_v28 = vadd.f32 %v1654_v24, %v1449_v23 }
 0x64f   :  { %1902 = vpow2.f32 %v1462_v22  ;;  %v1086_v30 = vadd.f32 %v1448_v25, %v1063_v26  ;;  %v1473_v26 = vld [vmem:[%s2463_s0 + $0x1e8] sm:$0xff] }
 0x650   :  { %1904 = vtanh.f32 %v1087_v28  ;;  %v1472_v28 = vld [vmem:[%s2463_s0 + $0x1e0] sm:$0xff] }
 0x651   :  { %v1657_v31 = vpop.f32.mrb[26].mxu1  ;;  %1906 = vtanh.f32 %v1086_v30  ;;  %v1475_v30 = vld [vmem:[%s2463_s0 + $0x1f8] sm:$0xff] }
 0x652   :  { %v1089_v32 = vadd.f32 %v1657_v31, %v1451_v27  ;;  %v1073_v33 = vpop.f32.mrb[27].mxu1 }
 0x653   :  { %v1088_v34 = vadd.f32 %v1450_v29, %v1073_v33 }
 0x654   :  { %v1897_v35 = vpop.eup %1896  ;;  %v1465_v36 = vmul.f32 -1.442695, %v1089_v32  ;;  %v1474_v32 = vld [vmem:[%s2463_s0 + $0x1f0] sm:$0xff] }
 0x655   :  { %v1899_v37 = vpop.eup %1898  ;;  %v1097_v40 = vadd.f32 1.0, %v1897_v35  ;;  %v1464_v41 = vmul.f32 -1.442695, %v1088_v34 }
 0x656   :  { %v1096_v42 = vadd.f32 1.0, %v1899_v37  ;;  %1908 = vpow2.f32 %v1465_v36 }
 0x657   :  { %1910 = vrcp.f32 %v1097_v40 }
 0x658   :  { %v1901_v43 = vpop.eup %1900  ;;  %1912 = vrcp.f32 %v1096_v42 }
 0x659   :  { %v1903_v44 = vpop.eup %1902  ;;  %v1109_v53 = vadd.f32 1.0, %v1901_v43  ;;  %1914 = vpow2.f32 %v1464_v41 }
 0x65a   :  { %v1108_v54 = vadd.f32 1.0, %v1903_v44  ;;  %v1905_v55 = vpop.eup %1904 }
 0x65b   :  { %1916 = vrcp.f32 %v1109_v53  ;;  %v1907_v56 = vpop.eup %1906 }
 0x65c   :  { %1918 = vrcp.f32 %v1108_v54 }
 0x660   :  { %v1909_v57 = vpop.eup %1908 }
 0x661   :  { %v1911_v39 = vpop.eup %1910  ;;  %v1123_v46 = vadd.f32 1.0, %v1909_v57 }
 0x662   :  { %v1913_v59 = vpop.eup %1912  ;;  %v1131_v60 = vmul.f32 %v1911_v39, %v1905_v55 }
 0x663   :  { %v1915_v61 = vpop.eup %1914  ;;  %v1130_v62 = vmul.f32 %v1913_v59, %v1907_v56  ;;  %1920 = vrcp.f32 %v1123_v46 }
 0x664   :  { %v1122_v1 = vadd.f32 1.0, %v1915_v61 }
 0x665   :  { %v1917_v0 = vpop.eup %1916 }
 0x666   :  { %v1919_v2 = vpop.eup %1918  ;;  %v1129_v3 = vmul.f32 %v1917_v0, %v2330_v7  ;;  %1922 = vrcp.f32 %v1122_v1 }
 0x667   :  { %v1128_v38 = vmul.f32 %v1919_v2, %v2332_v10  ;;  %v1961_v10 = vld [vmem:[%s2464_s1 + $0x8] sm:$0xff] }
 0x668   :  { %v2389_v5 = vadd.f32 %v1131_v60, %v1129_v3 }
 0x669   :  { %v2391_v6 = vadd.f32 %v1130_v62, %v1128_v38 }
 0x66a   :  { %1924 = vtanh.f32 %v2389_v5 }
 0x66b   :  { %1926 = vtanh.f32 %v2391_v6 }
 0x66d   :  { %v1921_v11 = vpop.eup %1920 }
 0x670   :  { %v1923_v63 = vpop.eup %1922 }
 0x674   :  { %v1925_v45 = vpop.eup %1924 }
 0x675   :  { %v1927_v9 = vpop.eup %1926  ;;  %v1137_v12 = vmul.f32 %v1925_v45, %v1921_v11 }
 0x676   :  { %v1136_v13 = vmul.f32 %v1927_v9, %v1923_v63 }
 0x677   :  { %1467 = vst.msk [vmem:[%s2465_s2 + $0x68] sm:$0xff] %vm75_vm1, %v1137_v12 }
 0x678   :  { %1466 = vst.msk [vmem:[%s2465_s2 + $0x60] sm:$0xff] %vm75_vm1, %v1136_v13  ;;  %v1698_v7 = vpack.c.bf16 %v1137_v12, %v1136_v13 }
 0x67a   :  { %1699 = vmatprep.subr.bf16.mxu0 %v1698_v7 }
 0x67b   :  { %1701 = vmatpush3.bf16.msra.mxu0 %v1698_v7 }
 0x67e   :  { %1663 = vmatmul.mubr.msk.f32.vlgmr.msra.gmra.mrb[20].mxu0 %vm87_vm0, %v1961_v10 }
 0x67f   :  { %1665 = vmatprep.mubr.msk.f32.mxu0 %vm87_vm0, %v1962_v4 }
 0x682   :  { %1666 = vmatmul.mubr.msk.f32.gmra.mrb[22].mxu0 %vm87_vm0, %v1963_v47 }
 0x683   :  { %1668 = vmatprep.mubr.msk.f32.mxu0 %vm87_vm0, %v2353_v58  ;;  %v1469_v58 = vld [vmem:[%s2463_s0 + $0x1c8] sm:$0xff] }
 0x686   :  { %1669 = vmatmul.mubr.msk.f32.gmra.mrb[24].mxu0 %vm87_vm0, %v1964_v49 }
 0x687   :  { %1671 = vmatprep.mubr.msk.f32.mxu0 %vm87_vm0, %v1965_v51 }
 0x68a   :  { %1672 = vmatmul.mubr.msk.f32.gmra.mrb[26].mxu0 %vm87_vm0, %v1966_v14 }
 0x751   :  { %v1664_v16 = vpop.f32.mrb[20].mxu0 }
 0x752   :  { %v1256_v48 = vadd.f32 %v1664_v16, %v1469_v58  ;;  %v1216_v50 = vpop.f32.mrb[21].mxu0 }
 0x753   :  { %v1255_v52 = vadd.f32 %v1468_v15, %v1216_v50 }
 0x754   :  { %v1485_v8 = vmul.f32 -1.442695, %v1256_v48 }
 0x755   :  { %v1484_v19 = vmul.f32 -1.442695, %v1255_v52  ;;  %v1667_v20 = vpop.f32.mrb[22].mxu0 }
 0x756   :  { %1928 = vpow2.f32 %v1485_v8  ;;  %v1258_v21 = vadd.f32 %v1667_v20, %v1471_v17  ;;  %v1226_v22 = vpop.f32.mrb[23].mxu0 }
 0x757   :  { %1930 = vpow2.f32 %v1484_v19  ;;  %v1257_v23 = vadd.f32 %v1470_v18, %v1226_v22 }
 0x758   :  { %v1487_v24 = vmul.f32 -1.442695, %v1258_v21 }
 0x759   :  { %v1486_v25 = vmul.f32 -1.442695, %v1257_v23  ;;  %v1670_v27 = vpop.f32.mrb[24].mxu0 }
 0x75a   :  { %1932 = vpow2.f32 %v1487_v24  ;;  %v1236_v29 = vpop.f32.mrb[25].mxu0  ;;  %v1260_v31 = vadd.f32 %v1670_v27, %v1473_v26 }
 0x75b   :  { %1934 = vpow2.f32 %v1486_v25  ;;  %v1259_v33 = vadd.f32 %v1472_v28, %v1236_v29 }
 0x75c   :  { %1936 = vtanh.f32 %v1260_v31 }
 0x75d   :  { %v1673_v34 = vpop.f32.mrb[26].mxu0  ;;  %1938 = vtanh.f32 %v1259_v33 }
 0x75e   :  { %v1262_v35 = vadd.f32 %v1673_v34, %v1475_v30  ;;  %v1246_v36 = vpop.f32.mrb[27].mxu0 }
 0x75f   :  { %v1261_v37 = vadd.f32 %v1474_v32, %v1246_v36 }
 0x760   :  { %v1929_v40 = vpop.eup %1928  ;;  %v1489_v41 = vmul.f32 -1.442695, %v1262_v35 }
 0x761   :  { %v1931_v42 = vpop.eup %1930  ;;  %v1270_v43 = vadd.f32 1.0, %v1929_v40  ;;  %v1488_v44 = vmul.f32 -1.442695, %v1261_v37 }
 0x762   :  { %v1269_v53 = vadd.f32 1.0, %v1931_v42  ;;  %1940 = vpow2.f32 %v1489_v41 }
 0x763   :  { %1942 = vrcp.f32 %v1270_v43 }
 0x764   :  { %v1933_v54 = vpop.eup %1932  ;;  %1944 = vrcp.f32 %v1269_v53 }
 0x765   :  { %v1935_v55 = vpop.eup %1934  ;;  %v1282_v56 = vadd.f32 1.0, %v1933_v54  ;;  %1946 = vpow2.f32 %v1488_v44 }
 0x766   :  { %v1281_v57 = vadd.f32 1.0, %v1935_v55  ;;  %v1937_v39 = vpop.eup %1936 }
 0x767   :  { %1948 = vrcp.f32 %v1282_v56  ;;  %v1939_v59 = vpop.eup %1938 }
 0x768   :  { %1950 = vrcp.f32 %v1281_v57 }
 0x76c   :  { %v1941_v60 = vpop.eup %1940 }
 0x76d   :  { %v1943_v61 = vpop.eup %1942  ;;  %v1296_v2 = vadd.f32 1.0, %v1941_v60 }
 0x76e   :  { %v1945_v62 = vpop.eup %1944  ;;  %v1304_v46 = vmul.f32 %v1943_v61, %v1937_v39 }
 0x76f   :  { %v1947_v0 = vpop.eup %1946  ;;  %v1303_v1 = vmul.f32 %v1945_v62, %v1939_v59  ;;  %1952 = vrcp.f32 %v1296_v2 }
 0x770   :  { %v1295_v38 = vadd.f32 1.0, %v1947_v0 }
 0x771   :  { %v1949_v3 = vpop.eup %1948 }
 0x772   :  { %v1951_v11 = vpop.eup %1950  ;;  %v1302_v63 = vmul.f32 %v1949_v3, %v2389_v5  ;;  %1954 = vrcp.f32 %v1295_v38 }
 0x773   :  { %v1301_v45 = vmul.f32 %v1951_v11, %v2391_v6 }
 0x774   :  { %v1306_v9 = vadd.f32 %v1304_v46, %v1302_v63 }
 0x775   :  { %v1305_v12 = vadd.f32 %v1303_v1, %v1301_v45 }
 0x776   :  { %1956 = vtanh.f32 %v1306_v9 }
 0x777   :  { %1958 = vtanh.f32 %v1305_v12 }
 0x779   :  { %v1953_v13 = vpop.eup %1952 }
 0x77c   :  { %v1955_v7 = vpop.eup %1954 }
 0x780   :  { %v1957_v10 = vpop.eup %1956 }
 0x781   :  { %v1959_v4 = vpop.eup %1958  ;;  %v1310_v47 = vmul.f32 %v1957_v10, %v1953_v13 }
 0x782   :  { %v1309_v49 = vmul.f32 %v1959_v4, %v1955_v7 }
 0x783   :  { %1491 = vst.msk [vmem:[%s2465_s2 + $0x78] sm:$0xff] %vm75_vm1, %v1310_v47 }
 0x784   :  { %1490 = vst.msk [vmem:[%s2465_s2 + $0x70] sm:$0xff] %vm75_vm1, %v1309_v49 }

</bundles_post_ra>
